<compile_context>
chip_gen: v6e
topology: v6e:2x2x1
jax: 0.10.0
libtpu: 0.0.40
codegen_flags: <defaults>
</compile_context>

<pallas_src>
import functools

import jax
import jax.numpy as jnp
from jax.experimental import pallas as pl
from jax.experimental.pallas import tpu as pltpu

_NEG_INF = -1e30
_VMEM_LIMIT = 56 * 1024 * 1024  # below v7x's 64 MiB/TC, above v5e/v6e default scoped limit


# ----------------------------------------------------------------------------
# Attention (+ residual + LayerNorm) kernel — flash-style over S chunks
# ----------------------------------------------------------------------------
def _flash_attn_ln_kernel(active_ref, hs_ref, kvsrc_ref, mask_ref,
                          wq_ref, bq_ref, wkv_ref, bkv_ref, wo_ref, bo_ref,
                          gamma_ref, beta_ref, out_ref,
                          k_scr, v_scr, q_scr, m_scr, l_scr, acc_scr,
                          *, num_heads, head_dim, tile_s, eps, compute_dtype):
    embed_dim = num_heads * head_dim
    b_idx = pl.program_id(0)
    t_idx = pl.program_id(1)
    s_idx = pl.program_id(2)
    n_t = pl.num_programs(1)
    n_s = pl.num_programs(2)

    # --- K/V projection of this S chunk: once per (batch, s), at the first T tile.
    @pl.when(t_idx == 0)
    def _():
        row0 = pl.multiple_of(s_idx * tile_s, tile_s)
        src = kvsrc_ref[0, pl.ds(row0, tile_s), :]                        # (Ts, E)
        kvp = jnp.dot(src, wkv_ref[...],
                      preferred_element_type=jnp.float32) + bkv_ref[...]  # (Ts, 2E) f32
        k = kvp[:, :embed_dim].reshape(tile_s, num_heads, head_dim)
        v = kvp[:, embed_dim:].reshape(tile_s, num_heads, head_dim)
        k_scr[s_idx] = jnp.transpose(k, (1, 0, 2)).astype(k_scr.dtype)    # (H, Ts, Dh)
        v_scr[s_idx] = jnp.transpose(v, (1, 0, 2)).astype(v_scr.dtype)    # (H, Ts, Dh)

    # --- per-(batch, T-tile) init: flash state + Q projection (scaling folded into wq/bq).
    @pl.when(s_idx == 0)
    def _():
        m_scr[...] = jnp.full(m_scr.shape, _NEG_INF, m_scr.dtype)
        l_scr[...] = jnp.zeros(l_scr.shape, l_scr.dtype)
        acc_scr[...] = jnp.zeros(acc_scr.shape, acc_scr.dtype)
        hs = hs_ref[0].astype(compute_dtype)
        q = jnp.dot(hs, wq_ref[...], preferred_element_type=jnp.float32) + bq_ref[...]
        q = q.reshape(-1, num_heads, head_dim)
        q_scr[...] = jnp.transpose(q, (1, 0, 2)).astype(q_scr.dtype)      # (H, Tt, Dh)

    # --- online-softmax update; fully masked blocks (e.g. causal future) are skipped.
    # TODO(synk): rows that are fully masked across *all* blocks would give NaN here
    # (reference gives a uniform softmax); does not occur for causal/padding masks.
    active = active_ref[(b_idx * n_t + t_idx) * n_s + s_idx]

    @pl.when(active != 0)
    def _():
        qh = q_scr[...]                                                   # (H, Tt, Dh)
        kh = k_scr[s_idx]                                                 # (H, Ts, Dh)
        vh = v_scr[s_idx]                                                 # (H, Ts, Dh)
        scores = jnp.einsum('hqd,hkd->hqk', qh, kh,
                            preferred_element_type=jnp.float32)           # (H, Tt, Ts) f32
        scores = scores + mask_ref[0, 0][None, :, :].astype(jnp.float32)

        m_prev = m_scr[...]
        m_new = jnp.maximum(m_prev, jnp.max(scores, axis=-1))             # (H, Tt) f32
        alpha = jnp.exp(m_prev - m_new)                                   # f32
        # big exp in compute_dtype (bf16 EUP on v6e/v7x); row max / sum stay f32
        p = jnp.exp((scores - m_new[:, :, None]).astype(compute_dtype))   # (H, Tt, Ts)
        l_scr[...] = alpha * l_scr[...] + jnp.sum(p, axis=-1, dtype=jnp.float32)
        pv = jnp.einsum('hqk,hkd->hqd', p, vh,
                        preferred_element_type=jnp.float32)               # (H, Tt, Dh) f32
        acc_scr[...] = alpha[:, :, None] * acc_scr[...] + pv
        m_scr[...] = m_new

    # --- finalize on the last S chunk: out-proj + residual + LayerNorm.
    @pl.when(s_idx == n_s - 1)
    def _():
        inv_l = pl.reciprocal(l_scr[...], approx=True)                    # (H, Tt)
        o = acc_scr[...] * inv_l[:, :, None]                              # (H, Tt, Dh) f32
        ctx = jnp.transpose(o, (1, 0, 2)).reshape(-1, embed_dim).astype(compute_dtype)
        attn = jnp.dot(ctx, wo_ref[...], preferred_element_type=jnp.float32) + bo_ref[...]
        x = attn + hs_ref[0].astype(jnp.float32)
        mean = jnp.mean(x, axis=-1, keepdims=True)
        var = jnp.mean(jnp.square(x - mean), axis=-1, keepdims=True)
        y = (x - mean) * jax.lax.rsqrt(var + eps)
        out_ref[0] = (y * gamma_ref[...] + beta_ref[...]).astype(out_ref.dtype)


def bart_attention_ln(hidden, kv, mask, attn_p, ln_p, num_heads,
                      compute_dtype=jnp.bfloat16, out_dtype=None, eps=1e-5,
                      tile_t=256, tile_s=256):
    """LayerNorm(x + BartAttention(x, kv, additive mask))."""
    B, T, E = hidden.shape
    S = kv.shape[1]
    head_dim = E // num_heads
    scaling = head_dim ** -0.5
    out_dtype = hidden.dtype if out_dtype is None else out_dtype

    tile_t = min(tile_t, T)
    tile_s = min(tile_s, S)
    # TODO(synk): pad T/S (or use pl.BoundedSlice) for lengths not divisible by the tiles.
    assert T % tile_t == 0 and S % tile_s == 0, "T/S must be divisible by the tile sizes"
    nt, ns = T // tile_t, S // tile_s

    # Per-block activity table (SMEM scalar prefetch): 1 iff any visible position.
    active = jnp.any(mask.reshape(B, nt, tile_t, ns, tile_s) > -1e8,
                     axis=(2, 4)).astype(jnp.int32).reshape(-1)

    # Pre-transpose / fuse / fold weights in the wrapper (one-time XLA ops); bf16 operands.
    wq_t = (attn_p['wq'] * scaling).T.astype(compute_dtype)                     # (E, E)
    bq = (attn_p['bq'] * scaling).astype(jnp.float32)                           # (1, E)
    wkv_t = jnp.concatenate([attn_p['wk'].T, attn_p['wv'].T], axis=1).astype(compute_dtype)  # (E, 2E)
    bkv = jnp.concatenate([attn_p['bk'], attn_p['bv']], axis=1).astype(jnp.float32)          # (1, 2E)
    wo_t = attn_p['wo'].T.astype(compute_dtype)                                 # (E, E)
    bo = attn_p['bo'].astype(jnp.float32)
    gamma = ln_p['gamma'].astype(jnp.float32)
    beta = ln_p['beta'].astype(jnp.float32)
    kv_c = kv.astype(compute_dtype)
    mask_c = mask.astype(compute_dtype)

    kernel = functools.partial(
        _flash_attn_ln_kernel, num_heads=num_heads, head_dim=head_dim,
        tile_s=tile_s, eps=eps, compute_dtype=compute_dtype)

    def wspec(shape):  # constant-index weights/biases: single-buffered (halves residency)
        return pl.BlockSpec(shape, lambda b, t, s, act: (0,) * len(shape),
                            pipeline_mode=pl.Buffered(1))

    isz = jnp.dtype(compute_dtype).itemsize
    cost = pl.CostEstimate(
        flops=int(2 * B * (2 * T * E * E + 2 * S * E * E + 2 * T * S * E)),
        transcendentals=int(B * num_heads * T * S),
        bytes_accessed=int(B * T * E * (jnp.dtype(hidden.dtype).itemsize
                                        + jnp.dtype(out_dtype).itemsize)
                           + B * S * E * isz + B * T * S * isz + 4 * E * E * isz))

    grid_spec = pltpu.PrefetchScalarGridSpec(
        num_scalar_prefetch=1,
        grid=(B, nt, ns),
        in_specs=[
            pl.BlockSpec((1, tile_t, E), lambda b, t, s, act: (b, t, 0)),   # residual / Q source
            pl.BlockSpec((1, S, E), lambda b, t, s, act: (b, 0, 0)),        # K/V source (resident per batch)
            pl.BlockSpec((1, 1, tile_t, tile_s), lambda b, t, s, act: (b, 0, t, s)),
            wspec((E, E)), wspec((1, E)),
            wspec((E, 2 * E)), wspec((1, 2 * E)),
            wspec((E, E)), wspec((1, E)),
            wspec((1, E)), wspec((1, E)),
        ],
        out_specs=pl.BlockSpec((1, tile_t, E), lambda b, t, s, act: (b, t, 0)),
        scratch_shapes=[
            pltpu.VMEM((ns, num_heads, tile_s, head_dim), compute_dtype),   # cached K
            pltpu.VMEM((ns, num_heads, tile_s, head_dim), compute_dtype),   # cached V
            pltpu.VMEM((num_heads, tile_t, head_dim), compute_dtype),       # cached Q
            pltpu.VMEM((num_heads, tile_t), jnp.float32),                   # m
            pltpu.VMEM((num_heads, tile_t), jnp.float32),                   # l
            pltpu.VMEM((num_heads, tile_t, head_dim), jnp.float32),         # acc
        ],
    )

    return pl.pallas_call(
        kernel,
        out_shape=jax.ShapeDtypeStruct((B, T, E), out_dtype),
        grid_spec=grid_spec,
        compiler_params=pltpu.CompilerParams(
            dimension_semantics=("parallel", "arbitrary", "arbitrary"),
            vmem_limit_bytes=_VMEM_LIMIT),
        cost_estimate=cost,
    )(active, hidden, kv_c, mask_c, wq_t, bq, wkv_t, bkv, wo_t, bo, gamma, beta)


# ----------------------------------------------------------------------------
# FFN (+ residual + LayerNorm) kernel
# ----------------------------------------------------------------------------
def _ffn_ln_kernel(x_ref, w1_ref, b1_ref, w2_ref, b2_ref, gamma_ref, beta_ref,
                   out_ref, *scratch, eps, compute_dtype):
    x_f32 = x_ref[0].astype(jnp.float32)                     # (Tt, E) residual
    x = x_f32.astype(compute_dtype)
    h = jnp.dot(x, w1_ref[...], preferred_element_type=jnp.float32) + b1_ref[...]
    # exact (erf) GELU to match F.gelu;
    # TODO(synk): approximate=True (tanh via EUP) if numerics allow.
    h = jax.nn.gelu(h, approximate=False).astype(compute_dtype)
    part = jnp.dot(h, w2_ref[...], preferred_element_type=jnp.float32)

    def _finish(acc):
        y = acc + b2_ref[...] + x_f32
        mean = jnp.mean(y, axis=-1, keepdims=True)
        var = jnp.mean(jnp.square(y - mean), axis=-1, keepdims=True)
        z = (y - mean) * jax.lax.rsqrt(var + eps)
        out_ref[0] = (z * gamma_ref[...] + beta_ref[...]).astype(out_ref.dtype)

    if not scratch:                       # whole FFN dim in one chunk (nf == 1)
        _finish(part)
    else:                                 # FFN dim is a reduction grid axis
        acc_ref = scratch[0]

        @pl.when(pl.program_id(2) == 0)
        def _():
            acc_ref[...] = jnp.zeros(acc_ref.shape, acc_ref.dtype)

        acc_ref[...] += part

        @pl.when(pl.program_id(2) == pl.num_programs(2) - 1)
        def _():
            _finish(acc_ref[...])


def bart_ffn_ln(hidden, ffn_p, ln_p, compute_dtype=jnp.bfloat16, out_dtype=None,
                eps=1e-5, tile_t=256, tile_f=None):
    """LayerNorm(x + fc2(gelu(fc1(x))))."""
    B, T, E = hidden.shape
    FFN = ffn_p['w1'].shape[0]
    out_dtype = hidden.dtype if out_dtype is None else out_dtype

    tile_t = min(tile_t, T)
    tile_f = FFN if tile_f is None else min(tile_f, FFN)
    assert T % tile_t == 0 and FFN % tile_f == 0
    nt, nf = T // tile_t, FFN // tile_f

    w1_t = ffn_p['w1'].T.astype(compute_dtype)    # (E, FFN)
    w2_t = ffn_p['w2'].T.astype(compute_dtype)    # (FFN, E)
    b1 = ffn_p['b1'].astype(jnp.float32)
    b2 = ffn_p['b2'].astype(jnp.float32)
    gamma = ln_p['gamma'].astype(jnp.float32)
    beta = ln_p['beta'].astype(jnp.float32)

    single = pl.Buffered(1)
    w_mode = single if nf == 1 else None          # w1/w2 only constant-index when nf == 1

    kernel = functools.partial(_ffn_ln_kernel, eps=eps, compute_dtype=compute_dtype)
    isz = jnp.dtype(compute_dtype).itemsize
    cost = pl.CostEstimate(
        flops=int(4 * B * T * E * FFN),
        transcendentals=int(B * T * FFN),
        bytes_accessed=int(B * T * E * (jnp.dtype(hidden.dtype).itemsize
                                        + jnp.dtype(out_dtype).itemsize)
                           + 2 * E * FFN * isz))

    return pl.pallas_call(
        kernel,
        out_shape=jax.ShapeDtypeStruct((B, T, E), out_dtype),
        grid=(B, nt, nf),
        in_specs=[
            pl.BlockSpec((1, tile_t, E), lambda b, t, f: (b, t, 0)),
            pl.BlockSpec((E, tile_f), lambda b, t, f: (0, f), pipeline_mode=w_mode),
            pl.BlockSpec((1, tile_f), lambda b, t, f: (0, f), pipeline_mode=w_mode),
            pl.BlockSpec((tile_f, E), lambda b, t, f: (f, 0), pipeline_mode=w_mode),
            pl.BlockSpec((1, E), lambda b, t, f: (0, 0), pipeline_mode=single),
            pl.BlockSpec((1, E), lambda b, t, f: (0, 0), pipeline_mode=single),
            pl.BlockSpec((1, E), lambda b, t, f: (0, 0), pipeline_mode=single),
        ],
        out_specs=pl.BlockSpec((1, tile_t, E), lambda b, t, f: (b, t, 0)),
        scratch_shapes=([] if nf == 1 else [pltpu.VMEM((tile_t, E), jnp.float32)]),
        compiler_params=pltpu.CompilerParams(
            dimension_semantics=("parallel", "parallel", "arbitrary"),
            vmem_limit_bytes=_VMEM_LIMIT),
        cost_estimate=cost,
    )(hidden, w1_t, b1, w2_t, b2, gamma, beta)


# ----------------------------------------------------------------------------
# Decoder layer
# ----------------------------------------------------------------------------
def bart_decoder_layer(hidden, attn_mask, enc_hidden, enc_mask, params, num_heads,
                       compute_dtype=jnp.bfloat16,
                       attn_tile_t=256, attn_tile_s=256,
                       ffn_tile_t=256, ffn_tile_f=None):
    """Eval-mode BartDecoderLayer.forward (all dropouts are identity)."""
    act_dtype = compute_dtype        # low-precision activations between the 3 kernels
    h = bart_attention_ln(hidden, hidden, attn_mask,
                          params['self_attn'], params['self_attn_ln'], num_heads,
                          compute_dtype, out_dtype=act_dtype,
                          tile_t=attn_tile_t, tile_s=attn_tile_s)
    h = bart_attention_ln(h, enc_hidden, enc_mask,
                          params['encoder_attn'], params['encoder_attn_ln'], num_heads,
                          compute_dtype, out_dtype=act_dtype,
                          tile_t=attn_tile_t, tile_s=attn_tile_s)
    return bart_ffn_ln(h, params['ffn'], params['final_ln'],
                       compute_dtype, out_dtype=hidden.dtype,
                       tile_t=ffn_tile_t, tile_f=ffn_tile_f)


# ----------------------------------------------------------------------------
# Plain-JAX reference (correctness check)
# ----------------------------------------------------------------------------
def _ref_attention(hidden, kv, mask, p, num_heads):
    B, T, E = hidden.shape
    Dh = E // num_heads
    q = (hidden @ p['wq'].T + p['bq']) * (Dh ** -0.5)
    k = kv @ p['wk'].T + p['bk']
    v = kv @ p['wv'].T + p['bv']
    qh = q.reshape(B, T, num_heads, Dh).transpose(0, 2, 1, 3)
    kh = k.reshape(B, -1, num_heads, Dh).transpose(0, 2, 1, 3)
    vh = v.reshape(B, -1, num_heads, Dh).transpose(0, 2, 1, 3)
    scores = jnp.einsum('bhtd,bhsd->bhts', qh, kh) + mask
    probs = jax.nn.softmax(scores, axis=-1)
    ctx = jnp.einsum('bhts,bhsd->bhtd', probs, vh).transpose(0, 2, 1, 3).reshape(B, T, E)
    return ctx @ p['wo'].T + p['bo']


def _ref_ln(x, p, eps=1e-5):
    mean = jnp.mean(x, axis=-1, keepdims=True)
    var = jnp.mean(jnp.square(x - mean), axis=-1, keepdims=True)
    return (x - mean) * jax.lax.rsqrt(var + eps) * p['gamma'] + p['beta']


def _ref_decoder_layer(hidden, attn_mask, enc_hidden, enc_mask, params, num_heads):
    h = _ref_ln(hidden + _ref_attention(hidden, hidden, attn_mask,
                                        params['self_attn'], num_heads),
                params['self_attn_ln'])
    h = _ref_ln(h + _ref_attention(h, enc_hidden, enc_mask,
                                   params['encoder_attn'], num_heads),
                params['encoder_attn_ln'])
    ff = jax.nn.gelu(h @ params['ffn']['w1'].T + params['ffn']['b1'],
                     approximate=False) @ params['ffn']['w2'].T + params['ffn']['b2']
    return _ref_ln(h + ff, params['final_ln'])


# ----------------------------------------------------------------------------
# Parameter init & main
# ----------------------------------------------------------------------------
def _init_params(key, embed_dim, ffn_dim, init_std=0.02):
    ks = jax.random.split(key, 4)

    def attn_params(k4):
        k0, k1, k2, k3 = jax.random.split(k4, 4)
        return {
            'wq': jax.random.normal(k0, (embed_dim, embed_dim), jnp.float32) * init_std,
            'bq': jnp.zeros((1, embed_dim), jnp.float32),
            'wk': jax.random.normal(k1, (embed_dim, embed_dim), jnp.float32) * init_std,
            'bk': jnp.zeros((1, embed_dim), jnp.float32),
            'wv': jax.random.normal(k2, (embed_dim, embed_dim), jnp.float32) * init_std,
            'bv': jnp.zeros((1, embed_dim), jnp.float32),
            'wo': jax.random.normal(k3, (embed_dim, embed_dim), jnp.float32) * init_std,
            'bo': jnp.zeros((1, embed_dim), jnp.float32),
        }

    def ln_params():
        return {'gamma': jnp.ones((1, embed_dim), jnp.float32),
                'beta': jnp.zeros((1, embed_dim), jnp.float32)}

    return {
        'self_attn': attn_params(ks[0]),
        'self_attn_ln': ln_params(),
        'encoder_attn': attn_params(ks[1]),
        'encoder_attn_ln': ln_params(),
        'ffn': {
            'w1': jax.random.normal(ks[2], (ffn_dim, embed_dim), jnp.float32) * init_std,
            'b1': jnp.zeros((1, ffn_dim), jnp.float32),
            'w2': jax.random.normal(ks[3], (embed_dim, ffn_dim), jnp.float32) * init_std,
            'b2': jnp.zeros((1, embed_dim), jnp.float32),
        },
        'final_ln': ln_params(),
    }


if __name__ == "__main__":
    # Scaled-down BART decoder layer: d_model=32, heads=4, ffn=256, seq=16.
    B, T, S_enc, E, H, FFN = 2, 16, 16, 32, 4, 256

    key = jax.random.PRNGKey(0)
    k_hid, k_enc, k_par = jax.random.split(key, 3)

    hidden = jax.random.normal(k_hid, (B, T, E), jnp.float32)
    enc_hidden = jax.random.normal(k_enc, (B, S_enc, E), jnp.float32)

    # causal additive mask for self-attention, all-visible for cross-attention
    causal = jnp.where(jnp.tril(jnp.ones((T, T), jnp.bool_)), 0.0, -1e9).astype(jnp.float32)
    attn_mask = jnp.broadcast_to(causal, (B, 1, T, T))
    enc_mask = jnp.zeros((B, 1, T, S_enc), jnp.float32)

    params = _init_params(k_par, E, FFN)
    ref = _ref_decoder_layer(hidden, attn_mask, enc_hidden, enc_mask, params, H)

    # f32 matmul path with small explicit tiles: exercises multi-T-tile K/V-cache
    # reuse and the FFN reduction/accumulator path. Tight tolerance.
    out_f32 = bart_decoder_layer(hidden, attn_mask, enc_hidden, enc_mask, params, H,
                                 compute_dtype=jnp.float32,
                                 attn_tile_t=8, ffn_tile_t=8, ffn_tile_f=128)
    out_f32 = jax.block_until_ready(out_f32)
    assert out_f32.shape == (B, T, E)
    assert jnp.allclose(out_f32, ref, rtol=1e-2, atol=1e-2), "f32 mismatch vs reference"

    # bf16 matmul operands + bf16 inter-kernel activations (softmax/LN stats stay
    # f32), default tiling (single S / FFN chunk). Loose tolerance.
    out_bf16 = bart_decoder_layer(hidden, attn_mask, enc_hidden, enc_mask, params, H,
                                  compute_dtype=jnp.bfloat16)
    out_bf16 = jax.block_until_ready(out_bf16)
    assert jnp.allclose(out_bf16, ref, rtol=1.5e-1, atol=1.5e-1), "bf16 mismatch vs reference"

    print("KERNEL_OK")
</pallas_src>

<mosaic_0001>
module attributes {stable_mosaic.version = 11 : i64} {
  func.func @_flash_attn_ln_kernel(%arg0: i32, %arg1: i32, %arg2: i32, %arg3: memref<4xi32, #tpu.memory_space<smem>>, %arg4: memref<1x8x32xf32, #tpu.memory_space<vmem>>, %arg5: memref<1x16x32xf32, #tpu.memory_space<vmem>>, %arg6: memref<1x1x8x16xf32, #tpu.memory_space<vmem>>, %arg7: memref<32x32xf32, #tpu.memory_space<vmem>>, %arg8: memref<1x32xf32, #tpu.memory_space<vmem>>, %arg9: memref<32x64xf32, #tpu.memory_space<vmem>>, %arg10: memref<1x64xf32, #tpu.memory_space<vmem>>, %arg11: memref<32x32xf32, #tpu.memory_space<vmem>>, %arg12: memref<1x32xf32, #tpu.memory_space<vmem>>, %arg13: memref<1x32xf32, #tpu.memory_space<vmem>>, %arg14: memref<1x32xf32, #tpu.memory_space<vmem>>, %arg15: memref<1x8x32xf32, #tpu.memory_space<vmem>>, %arg16: memref<1x4x16x8xf32, #tpu.memory_space<vmem>>, %arg17: memref<1x4x16x8xf32, #tpu.memory_space<vmem>>, %arg18: memref<4x8x8xf32, #tpu.memory_space<vmem>>, %arg19: memref<4x8xf32, #tpu.memory_space<vmem>>, %arg20: memref<4x8xf32, #tpu.memory_space<vmem>>, %arg21: memref<4x8x8xf32, #tpu.memory_space<vmem>>) attributes {dimension_semantics = [#tpu.dimension_semantics<parallel>, #tpu.dimension_semantics<arbitrary>, #tpu.dimension_semantics<arbitrary>], iteration_bounds = array<i64: 2, 2, 1>, scalar_prefetch = 1 : i64, scratch_operands = 6 : i64, tpu.core_type = #tpu.core_type<tc>, window_params = [{transform_indices = @transform_0, window_bounds = array<i64: 1, 8, 32>}, {transform_indices = @transform_1, window_bounds = array<i64: 1, 16, 32>}, {transform_indices = @transform_2, window_bounds = array<i64: 1, 1, 8, 16>}, {pipeline_mode = #tpu.pipeline_mode<synchronous>, transform_indices = @transform_3, window_bounds = array<i64: 32, 32>}, {pipeline_mode = #tpu.pipeline_mode<synchronous>, transform_indices = @transform_4, window_bounds = array<i64: 1, 32>}, {pipeline_mode = #tpu.pipeline_mode<synchronous>, transform_indices = @transform_5, window_bounds = array<i64: 32, 64>}, {pipeline_mode = #tpu.pipeline_mode<synchronous>, transform_indices = @transform_6, window_bounds = array<i64: 1, 64>}, {pipeline_mode = #tpu.pipeline_mode<synchronous>, transform_indices = @transform_7, window_bounds = array<i64: 32, 32>}, {pipeline_mode = #tpu.pipeline_mode<synchronous>, transform_indices = @transform_8, window_bounds = array<i64: 1, 32>}, {pipeline_mode = #tpu.pipeline_mode<synchronous>, transform_indices = @transform_9, window_bounds = array<i64: 1, 32>}, {pipeline_mode = #tpu.pipeline_mode<synchronous>, transform_indices = @transform_10, window_bounds = array<i64: 1, 32>}, {transform_indices = @transform_11, window_bounds = array<i64: 1, 8, 32>}]} {
    %c0_i32 = arith.constant 0 : i32
    %0 = arith.cmpi eq, %arg1, %c0_i32 : i32
    %1 = arith.extui %0 : i1 to i32
    %c0_i32_0 = arith.constant 0 : i32
    %2 = arith.cmpi ne, %1, %c0_i32_0 : i32
    scf.if %2 {
      %c16_i32 = arith.constant 16 : i32
      %18 = arith.muli %arg2, %c16_i32 : i32
      %19 = tpu.assume_multiple %18, 16 : i32
      %c0 = arith.constant 0 : index
      %20 = arith.index_cast %19 : i32 to index
      %c0_7 = arith.constant 0 : index
      %21 = vector.load %arg5[%c0, %20, %c0_7] : memref<1x16x32xf32, #tpu.memory_space<vmem>>, vector<1x16x32xf32>
      %22 = vector.shape_cast %21 : vector<1x16x32xf32> to vector<16x32xf32>
      %c0_8 = arith.constant 0 : index
      %c0_9 = arith.constant 0 : index
      %23 = vector.load %arg9[%c0_8, %c0_9] : memref<32x64xf32, #tpu.memory_space<vmem>>, vector<32x64xf32>
      %cst = arith.constant dense<0.000000e+00> : vector<16x64xf32>
      %24 = tpu.matmul %22, %23, %cst {dimension_numbers = #tpu.dot_dimension_numbers<[1], [0], [0], [1], [0, 0, 1, 1], [], []>} : vector<16x32xf32>, vector<32x64xf32>, vector<16x64xf32> -> vector<16x64xf32>
      %c0_10 = arith.constant 0 : index
      %c0_11 = arith.constant 0 : index
      %25 = vector.load %arg10[%c0_10, %c0_11] : memref<1x64xf32, #tpu.memory_space<vmem>>, vector<1x64xf32>
      %26 = vector.broadcast %25 : vector<1x64xf32> to vector<16x64xf32>
      %27 = arith.addf %24, %26 : vector<16x64xf32>
      %28 = vector.extract_strided_slice %27 {offsets = [0, 0], sizes = [16, 32], strides = [1, 1]} : vector<16x64xf32> to vector<16x32xf32>
      %29 = vector.shape_cast %28 : vector<16x32xf32> to vector<16x4x8xf32>
      %30 = vector.extract_strided_slice %27 {offsets = [0, 32], sizes = [16, 32], strides = [1, 1]} : vector<16x64xf32> to vector<16x32xf32>
      %31 = vector.shape_cast %30 : vector<16x32xf32> to vector<16x4x8xf32>
      %32 = tpu.transpose %29, [1, 0, 2] : vector<16x4x8xf32> -> vector<4x16x8xf32>
      %33 = arith.index_cast %arg2 : i32 to index
      %c0_12 = arith.constant 0 : index
      %c0_13 = arith.constant 0 : index
      %c0_14 = arith.constant 0 : index
      %34 = vector.load %arg16[%33, %c0_12, %c0_13, %c0_14] : memref<1x4x16x8xf32, #tpu.memory_space<vmem>>, vector<1x4x16x8xf32>
      %35 = vector.shape_cast %34 : vector<1x4x16x8xf32> to vector<4x16x8xf32>
      %36 = vector.shape_cast %32 : vector<4x16x8xf32> to vector<1x4x16x8xf32>
      tpu.vector_store %arg16[%33, %c0_12, %c0_13, %c0_14], %36 {strides = array<i32>} : memref<1x4x16x8xf32, #tpu.memory_space<vmem>>, vector<1x4x16x8xf32>,
      %37 = tpu.transpose %31, [1, 0, 2] : vector<16x4x8xf32> -> vector<4x16x8xf32>
      %38 = arith.index_cast %arg2 : i32 to index
      %c0_15 = arith.constant 0 : index
      %c0_16 = arith.constant 0 : index
      %c0_17 = arith.constant 0 : index
      %39 = vector.load %arg17[%38, %c0_15, %c0_16, %c0_17] : memref<1x4x16x8xf32, #tpu.memory_space<vmem>>, vector<1x4x16x8xf32>
      %40 = vector.shape_cast %39 : vector<1x4x16x8xf32> to vector<4x16x8xf32>
      %41 = vector.shape_cast %37 : vector<4x16x8xf32> to vector<1x4x16x8xf32>
      tpu.vector_store %arg17[%38, %c0_15, %c0_16, %c0_17], %41 {strides = array<i32>} : memref<1x4x16x8xf32, #tpu.memory_space<vmem>>, vector<1x4x16x8xf32>,
    } else {
    }
    %c0_i32_1 = arith.constant 0 : i32
    %3 = arith.cmpi eq, %arg2, %c0_i32_1 : i32
    %4 = arith.extui %3 : i1 to i32
    %c0_i32_2 = arith.constant 0 : i32
    %5 = arith.cmpi ne, %4, %c0_i32_2 : i32
    scf.if %5 {
      %cst = arith.constant -1.000000e+30 : f32
      %18 = vector.broadcast %cst : f32 to vector<4x8xf32>
      %c0 = arith.constant 0 : index
      %c0_7 = arith.constant 0 : index
      %19 = vector.load %arg19[%c0, %c0_7] : memref<4x8xf32, #tpu.memory_space<vmem>>, vector<4x8xf32>
      tpu.vector_store %arg19[%c0, %c0_7], %18 {strides = array<i32>} : memref<4x8xf32, #tpu.memory_space<vmem>>, vector<4x8xf32>,
      %cst_8 = arith.constant 0.000000e+00 : f32
      %20 = vector.broadcast %cst_8 : f32 to vector<4x8xf32>
      %c0_9 = arith.constant 0 : index
      %c0_10 = arith.constant 0 : index
      %21 = vector.load %arg20[%c0_9, %c0_10] : memref<4x8xf32, #tpu.memory_space<vmem>>, vector<4x8xf32>
      tpu.vector_store %arg20[%c0_9, %c0_10], %20 {strides = array<i32>} : memref<4x8xf32, #tpu.memory_space<vmem>>, vector<4x8xf32>,
      %cst_11 = arith.constant 0.000000e+00 : f32
      %22 = vector.broadcast %cst_11 : f32 to vector<4x8x8xf32>
      %c0_12 = arith.constant 0 : index
      %c0_13 = arith.constant 0 : index
      %c0_14 = arith.constant 0 : index
      %23 = vector.load %arg21[%c0_12, %c0_13, %c0_14] : memref<4x8x8xf32, #tpu.memory_space<vmem>>, vector<4x8x8xf32>
      tpu.vector_store %arg21[%c0_12, %c0_13, %c0_14], %22 {strides = array<i32>} : memref<4x8x8xf32, #tpu.memory_space<vmem>>, vector<4x8x8xf32>,
      %c0_15 = arith.constant 0 : index
      %c0_16 = arith.constant 0 : index
      %c0_17 = arith.constant 0 : index
      %24 = vector.load %arg4[%c0_15, %c0_16, %c0_17] : memref<1x8x32xf32, #tpu.memory_space<vmem>>, vector<1x8x32xf32>
      %25 = vector.shape_cast %24 : vector<1x8x32xf32> to vector<8x32xf32>
      %c0_18 = arith.constant 0 : index
      %c0_19 = arith.constant 0 : index
      %26 = vector.load %arg7[%c0_18, %c0_19] : memref<32x32xf32, #tpu.memory_space<vmem>>, vector<32x32xf32>
      %cst_20 = arith.constant dense<0.000000e+00> : vector<8x32xf32>
      %27 = tpu.matmul %25, %26, %cst_20 {dimension_numbers = #tpu.dot_dimension_numbers<[1], [0], [0], [1], [0, 0, 1, 1], [], []>} : vector<8x32xf32>, vector<32x32xf32>, vector<8x32xf32> -> vector<8x32xf32>
      %c0_21 = arith.constant 0 : index
      %c0_22 = arith.constant 0 : index
      %28 = vector.load %arg8[%c0_21, %c0_22] : memref<1x32xf32, #tpu.memory_space<vmem>>, vector<1x32xf32>
      %29 = vector.broadcast %28 : vector<1x32xf32> to vector<8x32xf32>
      %30 = arith.addf %27, %29 : vector<8x32xf32>
      %31 = vector.shape_cast %30 : vector<8x32xf32> to vector<8x4x8xf32>
      %32 = tpu.transpose %31, [1, 0, 2] : vector<8x4x8xf32> -> vector<4x8x8xf32>
      %c0_23 = arith.constant 0 : index
      %c0_24 = arith.constant 0 : index
      %c0_25 = arith.constant 0 : index
      %33 = vector.load %arg18[%c0_23, %c0_24, %c0_25] : memref<4x8x8xf32, #tpu.memory_space<vmem>>, vector<4x8x8xf32>
      tpu.vector_store %arg18[%c0_23, %c0_24, %c0_25], %32 {strides = array<i32>} : memref<4x8x8xf32, #tpu.memory_space<vmem>>, vector<4x8x8xf32>,
    } else {
    }
    %c2_i32 = arith.constant 2 : i32
    %6 = arith.muli %arg0, %c2_i32 : i32
    %7 = arith.addi %6, %arg1 : i32
    %c1_i32 = arith.constant 1 : i32
    %8 = arith.muli %7, %c1_i32 : i32
    %9 = arith.addi %8, %arg2 : i32
    %10 = arith.index_cast %9 : i32 to index
    %11 = memref.load %arg3[%10] : memref<4xi32, #tpu.memory_space<smem>>
    %c0_i32_3 = arith.constant 0 : i32
    %12 = arith.cmpi ne, %11, %c0_i32_3 : i32
    %13 = arith.extui %12 : i1 to i32
    %c0_i32_4 = arith.constant 0 : i32
    %14 = arith.cmpi ne, %13, %c0_i32_4 : i32
    scf.if %14 {
      %c0 = arith.constant 0 : index
      %c0_7 = arith.constant 0 : index
      %c0_8 = arith.constant 0 : index
      %18 = vector.load %arg18[%c0, %c0_7, %c0_8] : memref<4x8x8xf32, #tpu.memory_space<vmem>>, vector<4x8x8xf32>
      %19 = arith.index_cast %arg2 : i32 to index
      %c0_9 = arith.constant 0 : index
      %c0_10 = arith.constant 0 : index
      %c0_11 = arith.constant 0 : index
      %20 = vector.load %arg16[%19, %c0_9, %c0_10, %c0_11] : memref<1x4x16x8xf32, #tpu.memory_space<vmem>>, vector<1x4x16x8xf32>
      %21 = vector.shape_cast %20 : vector<1x4x16x8xf32> to vector<4x16x8xf32>
      %22 = arith.index_cast %arg2 : i32 to index
      %c0_12 = arith.constant 0 : index
      %c0_13 = arith.constant 0 : index
      %c0_14 = arith.constant 0 : index
      %23 = vector.load %arg17[%22, %c0_12, %c0_13, %c0_14] : memref<1x4x16x8xf32, #tpu.memory_space<vmem>>, vector<1x4x16x8xf32>
      %24 = vector.shape_cast %23 : vector<1x4x16x8xf32> to vector<4x16x8xf32>
      "tpu.trace_start"() <{level = 10 : i32, message = "hqd,hkd->hqk"}> : () -> ()
      %cst = arith.constant dense<0.000000e+00> : vector<4x8x16xf32>
      %25 = tpu.matmul %18, %21, %cst {dimension_numbers = #tpu.dot_dimension_numbers<[2], [2], [1], [1], [0, 0, 0, 1, 1, 1], [0], [0]>} : vector<4x8x8xf32>, vector<4x16x8xf32>, vector<4x8x16xf32> -> vector<4x8x16xf32>
      "tpu.trace_stop"() : () -> ()
      %c0_15 = arith.constant 0 : index
      %c0_16 = arith.constant 0 : index
      %c0_17 = arith.constant 0 : index
      %c0_18 = arith.constant 0 : index
      %26 = vector.load %arg6[%c0_15, %c0_16, %c0_17, %c0_18] : memref<1x1x8x16xf32, #tpu.memory_space<vmem>>, vector<1x1x8x16xf32>
      %27 = vector.shape_cast %26 : vector<1x1x8x16xf32> to vector<8x16xf32>
      %28 = vector.shape_cast %27 : vector<8x16xf32> to vector<1x8x16xf32>
      %29 = vector.broadcast %28 : vector<1x8x16xf32> to vector<4x8x16xf32>
      %30 = arith.addf %25, %29 : vector<4x8x16xf32>
      %c0_19 = arith.constant 0 : index
      %c0_20 = arith.constant 0 : index
      %31 = vector.load %arg19[%c0_19, %c0_20] : memref<4x8xf32, #tpu.memory_space<vmem>>, vector<4x8xf32>
      %cst_21 = arith.constant dense<0xFF800000> : vector<4x8xf32>
      %32 = vector.multi_reduction <maximumf>, %30, %cst_21 [2] : vector<4x8x16xf32> to vector<4x8xf32>
      %33 = arith.maximumf %31, %32 : vector<4x8xf32>
      %34 = arith.subf %31, %33 : vector<4x8xf32>
      %35 = math.exp %34 : vector<4x8xf32>
      %36 = vector.shape_cast %33 : vector<4x8xf32> to vector<4x8x1xf32>
      %37 = vector.broadcast %36 : vector<4x8x1xf32> to vector<4x8x16xf32>
      %38 = arith.subf %30, %37 : vector<4x8x16xf32>
      %39 = math.exp %38 : vector<4x8x16xf32>
      %c0_22 = arith.constant 0 : index
      %c0_23 = arith.constant 0 : index
      %40 = vector.load %arg20[%c0_22, %c0_23] : memref<4x8xf32, #tpu.memory_space<vmem>>, vector<4x8xf32>
      %41 = arith.mulf %35, %40 : vector<4x8xf32>
      %cst_24 = arith.constant dense<0.000000e+00> : vector<4x8xf32>
      %42 = vector.multi_reduction <add>, %39, %cst_24 [2] : vector<4x8x16xf32> to vector<4x8xf32>
      %43 = arith.addf %41, %42 : vector<4x8xf32>
      %c0_25 = arith.constant 0 : index
      %c0_26 = arith.constant 0 : index
      %44 = vector.load %arg20[%c0_25, %c0_26] : memref<4x8xf32, #tpu.memory_space<vmem>>, vector<4x8xf32>
      tpu.vector_store %arg20[%c0_25, %c0_26], %43 {strides = array<i32>} : memref<4x8xf32, #tpu.memory_space<vmem>>, vector<4x8xf32>,
      "tpu.trace_start"() <{level = 10 : i32, message = "hqk,hkd->hqd"}> : () -> ()
      %cst_27 = arith.constant dense<0.000000e+00> : vector<4x8x8xf32>
      %45 = tpu.matmul %39, %24, %cst_27 {dimension_numbers = #tpu.dot_dimension_numbers<[2], [1], [1], [2], [0, 0, 0, 1, 1, 2], [0], [0]>} : vector<4x8x16xf32>, vector<4x16x8xf32>, vector<4x8x8xf32> -> vector<4x8x8xf32>
      "tpu.trace_stop"() : () -> ()
      %46 = vector.shape_cast %35 : vector<4x8xf32> to vector<4x8x1xf32>
      %c0_28 = arith.constant 0 : index
      %c0_29 = arith.constant 0 : index
      %c0_30 = arith.constant 0 : index
      %47 = vector.load %arg21[%c0_28, %c0_29, %c0_30] : memref<4x8x8xf32, #tpu.memory_space<vmem>>, vector<4x8x8xf32>
      %48 = vector.broadcast %46 : vector<4x8x1xf32> to vector<4x8x8xf32>
      %49 = arith.mulf %48, %47 : vector<4x8x8xf32>
      %50 = arith.addf %49, %45 : vector<4x8x8xf32>
      %c0_31 = arith.constant 0 : index
      %c0_32 = arith.constant 0 : index
      %c0_33 = arith.constant 0 : index
      %51 = vector.load %arg21[%c0_31, %c0_32, %c0_33] : memref<4x8x8xf32, #tpu.memory_space<vmem>>, vector<4x8x8xf32>
      tpu.vector_store %arg21[%c0_31, %c0_32, %c0_33], %50 {strides = array<i32>} : memref<4x8x8xf32, #tpu.memory_space<vmem>>, vector<4x8x8xf32>,
      %c0_34 = arith.constant 0 : index
      %c0_35 = arith.constant 0 : index
      %52 = vector.load %arg19[%c0_34, %c0_35] : memref<4x8xf32, #tpu.memory_space<vmem>>, vector<4x8xf32>
      tpu.vector_store %arg19[%c0_34, %c0_35], %33 {strides = array<i32>} : memref<4x8xf32, #tpu.memory_space<vmem>>, vector<4x8xf32>,
    } else {
    }
    %c0_i32_5 = arith.constant 0 : i32
    %15 = arith.cmpi eq, %arg2, %c0_i32_5 : i32
    %16 = arith.extui %15 : i1 to i32
    %c0_i32_6 = arith.constant 0 : i32
    %17 = arith.cmpi ne, %16, %c0_i32_6 : i32
    scf.if %17 {
      %c0 = arith.constant 0 : index
      %c0_7 = arith.constant 0 : index
      %18 = vector.load %arg20[%c0, %c0_7] : memref<4x8xf32, #tpu.memory_space<vmem>>, vector<4x8xf32>
      %19 = tpu.reciprocal %18 {approx = true} : vector<4x8xf32> -> vector<4x8xf32>
      %c0_8 = arith.constant 0 : index
      %c0_9 = arith.constant 0 : index
      %c0_10 = arith.constant 0 : index
      %20 = vector.load %arg21[%c0_8, %c0_9, %c0_10] : memref<4x8x8xf32, #tpu.memory_space<vmem>>, vector<4x8x8xf32>
      %21 = vector.shape_cast %19 : vector<4x8xf32> to vector<4x8x1xf32>
      %22 = vector.broadcast %21 : vector<4x8x1xf32> to vector<4x8x8xf32>
      %23 = arith.mulf %20, %22 : vector<4x8x8xf32>
      %24 = tpu.transpose %23, [1, 0, 2] : vector<4x8x8xf32> -> vector<8x4x8xf32>
      %25 = vector.shape_cast %24 : vector<8x4x8xf32> to vector<8x32xf32>
      %c0_11 = arith.constant 0 : index
      %c0_12 = arith.constant 0 : index
      %26 = vector.load %arg11[%c0_11, %c0_12] : memref<32x32xf32, #tpu.memory_space<vmem>>, vector<32x32xf32>
      %cst = arith.constant dense<0.000000e+00> : vector<8x32xf32>
      %27 = tpu.matmul %25, %26, %cst {dimension_numbers = #tpu.dot_dimension_numbers<[1], [0], [0], [1], [0, 0, 1, 1], [], []>} : vector<8x32xf32>, vector<32x32xf32>, vector<8x32xf32> -> vector<8x32xf32>
      %c0_13 = arith.constant 0 : index
      %c0_14 = arith.constant 0 : index
      %28 = vector.load %arg12[%c0_13, %c0_14] : memref<1x32xf32, #tpu.memory_space<vmem>>, vector<1x32xf32>
      %29 = vector.broadcast %28 : vector<1x32xf32> to vector<8x32xf32>
      %30 = arith.addf %27, %29 : vector<8x32xf32>
      %c0_15 = arith.constant 0 : index
      %c0_16 = arith.constant 0 : index
      %c0_17 = arith.constant 0 : index
      %31 = vector.load %arg4[%c0_15, %c0_16, %c0_17] : memref<1x8x32xf32, #tpu.memory_space<vmem>>, vector<1x8x32xf32>
      %32 = vector.shape_cast %31 : vector<1x8x32xf32> to vector<8x32xf32>
      %33 = arith.addf %30, %32 : vector<8x32xf32>
      %cst_18 = arith.constant dense<0.000000e+00> : vector<8xf32>
      %34 = vector.multi_reduction <add>, %33, %cst_18 [1] : vector<8x32xf32> to vector<8xf32>
      %35 = vector.shape_cast %34 : vector<8xf32> to vector<8x1xf32>
      %cst_19 = arith.constant 3.200000e+01 : f32
      %36 = vector.broadcast %cst_19 : f32 to vector<8x1xf32>
      %37 = arith.divf %35, %36 : vector<8x1xf32>
      %38 = vector.broadcast %37 : vector<8x1xf32> to vector<8x32xf32>
      %39 = arith.subf %33, %38 : vector<8x32xf32>
      %40 = arith.mulf %39, %39 : vector<8x32xf32>
      %cst_20 = arith.constant dense<0.000000e+00> : vector<8xf32>
      %41 = vector.multi_reduction <add>, %40, %cst_20 [1] : vector<8x32xf32> to vector<8xf32>
      %42 = vector.shape_cast %41 : vector<8xf32> to vector<8x1xf32>
      %cst_21 = arith.constant 3.200000e+01 : f32
      %43 = vector.broadcast %cst_21 : f32 to vector<8x1xf32>
      %44 = arith.divf %42, %43 : vector<8x1xf32>
      %45 = vector.broadcast %37 : vector<8x1xf32> to vector<8x32xf32>
      %46 = arith.subf %33, %45 : vector<8x32xf32>
      %cst_22 = arith.constant 9.99999974E-6 : f32
      %47 = vector.broadcast %cst_22 : f32 to vector<8x1xf32>
      %48 = arith.addf %44, %47 : vector<8x1xf32>
      %49 = math.rsqrt %48 : vector<8x1xf32>
      %50 = vector.broadcast %49 : vector<8x1xf32> to vector<8x32xf32>
      %51 = arith.mulf %46, %50 : vector<8x32xf32>
      %c0_23 = arith.constant 0 : index
      %c0_24 = arith.constant 0 : index
      %52 = vector.load %arg13[%c0_23, %c0_24] : memref<1x32xf32, #tpu.memory_space<vmem>>, vector<1x32xf32>
      %53 = vector.broadcast %52 : vector<1x32xf32> to vector<8x32xf32>
      %54 = arith.mulf %51, %53 : vector<8x32xf32>
      %c0_25 = arith.constant 0 : index
      %c0_26 = arith.constant 0 : index
      %55 = vector.load %arg14[%c0_25, %c0_26] : memref<1x32xf32, #tpu.memory_space<vmem>>, vector<1x32xf32>
      %56 = vector.broadcast %55 : vector<1x32xf32> to vector<8x32xf32>
      %57 = arith.addf %54, %56 : vector<8x32xf32>
      %c0_27 = arith.constant 0 : index
      %c0_28 = arith.constant 0 : index
      %c0_29 = arith.constant 0 : index
      %58 = vector.load %arg15[%c0_27, %c0_28, %c0_29] : memref<1x8x32xf32, #tpu.memory_space<vmem>>, vector<1x8x32xf32>
      %59 = vector.shape_cast %58 : vector<1x8x32xf32> to vector<8x32xf32>
      %60 = vector.shape_cast %57 : vector<8x32xf32> to vector<1x8x32xf32>
      tpu.vector_store %arg15[%c0_27, %c0_28, %c0_29], %60 {strides = array<i32>} : memref<1x8x32xf32, #tpu.memory_space<vmem>>, vector<1x8x32xf32>,
    } else {
    }
    return
  }
  func.func @transform_0(%arg0: i32, %arg1: i32, %arg2: i32, %arg3: memref<4xi32, #tpu.memory_space<smem>>) -> (i32, i32, i32) {
    %c0_i32 = arith.constant 0 : i32
    %c0_i32_0 = arith.constant 0 : i32
    return %arg0, %arg1, %c0_i32 : i32, i32, i32
  }
  func.func @transform_1(%arg0: i32, %arg1: i32, %arg2: i32, %arg3: memref<4xi32, #tpu.memory_space<smem>>) -> (i32, i32, i32) {
    %c0_i32 = arith.constant 0 : i32
    %c0_i32_0 = arith.constant 0 : i32
    %c0_i32_1 = arith.constant 0 : i32
    return %arg0, %c0_i32, %c0_i32_0 : i32, i32, i32
  }
  func.func @transform_2(%arg0: i32, %arg1: i32, %arg2: i32, %arg3: memref<4xi32, #tpu.memory_space<smem>>) -> (i32, i32, i32, i32) {
    %c0_i32 = arith.constant 0 : i32
    %c0_i32_0 = arith.constant 0 : i32
    return %arg0, %c0_i32, %arg1, %arg2 : i32, i32, i32, i32
  }
  func.func @transform_3(%arg0: i32, %arg1: i32, %arg2: i32, %arg3: memref<4xi32, #tpu.memory_space<smem>>) -> (i32, i32) {
    %c0_i32 = arith.constant 0 : i32
    %c0_i32_0 = arith.constant 0 : i32
    %c0_i32_1 = arith.constant 0 : i32
    return %c0_i32, %c0_i32_0 : i32, i32
  }
  func.func @transform_4(%arg0: i32, %arg1: i32, %arg2: i32, %arg3: memref<4xi32, #tpu.memory_space<smem>>) -> (i32, i32) {
    %c0_i32 = arith.constant 0 : i32
    %c0_i32_0 = arith.constant 0 : i32
    %c0_i32_1 = arith.constant 0 : i32
    return %c0_i32, %c0_i32_0 : i32, i32
  }
  func.func @transform_5(%arg0: i32, %arg1: i32, %arg2: i32, %arg3: memref<4xi32, #tpu.memory_space<smem>>) -> (i32, i32) {
    %c0_i32 = arith.constant 0 : i32
    %c0_i32_0 = arith.constant 0 : i32
    %c0_i32_1 = arith.constant 0 : i32
    return %c0_i32, %c0_i32_0 : i32, i32
  }
  func.func @transform_6(%arg0: i32, %arg1: i32, %arg2: i32, %arg3: memref<4xi32, #tpu.memory_space<smem>>) -> (i32, i32) {
    %c0_i32 = arith.constant 0 : i32
    %c0_i32_0 = arith.constant 0 : i32
    %c0_i32_1 = arith.constant 0 : i32
    return %c0_i32, %c0_i32_0 : i32, i32
  }
  func.func @transform_7(%arg0: i32, %arg1: i32, %arg2: i32, %arg3: memref<4xi32, #tpu.memory_space<smem>>) -> (i32, i32) {
    %c0_i32 = arith.constant 0 : i32
    %c0_i32_0 = arith.constant 0 : i32
    %c0_i32_1 = arith.constant 0 : i32
    return %c0_i32, %c0_i32_0 : i32, i32
  }
  func.func @transform_8(%arg0: i32, %arg1: i32, %arg2: i32, %arg3: memref<4xi32, #tpu.memory_space<smem>>) -> (i32, i32) {
    %c0_i32 = arith.constant 0 : i32
    %c0_i32_0 = arith.constant 0 : i32
    %c0_i32_1 = arith.constant 0 : i32
    return %c0_i32, %c0_i32_0 : i32, i32
  }
  func.func @transform_9(%arg0: i32, %arg1: i32, %arg2: i32, %arg3: memref<4xi32, #tpu.memory_space<smem>>) -> (i32, i32) {
    %c0_i32 = arith.constant 0 : i32
    %c0_i32_0 = arith.constant 0 : i32
    %c0_i32_1 = arith.constant 0 : i32
    return %c0_i32, %c0_i32_0 : i32, i32
  }
  func.func @transform_10(%arg0: i32, %arg1: i32, %arg2: i32, %arg3: memref<4xi32, #tpu.memory_space<smem>>) -> (i32, i32) {
    %c0_i32 = arith.constant 0 : i32
    %c0_i32_0 = arith.constant 0 : i32
    %c0_i32_1 = arith.constant 0 : i32
    return %c0_i32, %c0_i32_0 : i32, i32
  }
  func.func @transform_11(%arg0: i32, %arg1: i32, %arg2: i32, %arg3: memref<4xi32, #tpu.memory_space<smem>>) -> (i32, i32, i32) {
    %c0_i32 = arith.constant 0 : i32
    %c0_i32_0 = arith.constant 0 : i32
    return %arg0, %arg1, %c0_i32 : i32, i32, i32
  }
}

</mosaic_0001>

<bundles_post_ra>
// kernel: tpu_custom_call.1
= control target key start
LH: loop header
LB: loop body
LE: loop exit
PB: predicated region body
PF: predicated region fallthrough
CT: control target
= control target key end

     0   :  { %s3518_s21 = smov [#allocation9]   ;;  %s4241_s0 = inlined_call_operand.hbm [shape: s32[4], index: 0, kind: input, shape index: {}]   ;;  %s4242_s1 = inlined_call_operand.hbm [shape: f32[2,16,32], index: 1, kind: input, shape index: {}]   ;;  %s4243_s2 = inlined_call_operand.hbm [shape: f32[2,16,32], index: 2, kind: input, shape index: {}]   ;;  %s4244_s3 = inlined_call_operand.hbm [shape: f32[2,1,16,16], index: 3, kind: input, shape index: {}]   ;;  %s4245_s4 = inlined_call_operand.hbm [shape: f32[32,32], index: 4, kind: input, shape index: {}]   ;;  %s4246_s5 = inlined_call_operand.vmem [shape: f32[1,32], index: 5, kind: input, shape index: {}]   ;;  %s4247_s6 = inlined_call_operand.hbm [shape: f32[32,64], index: 6, kind: input, shape index: {}]   ;;  %s4248_s7 = inlined_call_operand.vmem [shape: f32[1,64], index: 7, kind: input, shape index: {}]   ;;  %s4249_s8 = inlined_call_operand.hbm [shape: f32[32,32], index: 8, kind: input, shape index: {}]   ;;  %s4250_s9 = inlined_call_operand.vmem [shape: f32[1,32], index: 9, kind: input, shape index: {}]   ;;  %s4251_s10 = inlined_call_operand.vmem [shape: f32[1,32], index: 10, kind: input, shape index: {}]   ;;  %s4252_s11 = inlined_call_operand.vmem [shape: f32[1,32], index: 11, kind: input, shape index: {}]   ;;  %s4253_s12 = inlined_call_operand.hbm [shape: f32[2,16,32], index: 12, kind: output, shape index: {}]  }
   0x1   :  { %4265 = sst [smem:[#allocation37_spill]] %s4243_s2 }
   0x2   :  { %4266 = sst [smem:[#allocation38_spill]] %s4245_s4 }
   0x3   :  { %4267 = sst [smem:[#allocation39_spill]] %s4246_s5 }
   0x4   :  { %4268 = sst [smem:[#allocation40_spill]] %s4247_s6 }
   0x5   :  { %4269 = sst [smem:[#allocation41_spill]] %s4248_s7 }
   0x6   :  { %4270 = sst [smem:[#allocation42_spill]] %s4249_s8 }
   0x7   :  { %4271 = sst [smem:[#allocation43_spill]] %s4250_s9 }
   0x8   :  { %4272 = sst [smem:[#allocation44_spill]] %s4251_s10 }
   0x9   :  { %4273 = sst [smem:[#allocation45_spill]] %s4252_s11 }
   0xa   :  { %4274 = sst [smem:[#allocation46_spill]] %s4253_s12 }
   0xb   :  { %18 = dma.hbm_to_smem %s4241_s0, 16, %s3518_s21, [#allocation8] }
   0xc   :  { %3448 = dma.done.wait [#allocation8], 16 }
   0xd   :  { %3449 = vsyncadd [#allocation8], 4294967280 }
   0xe   :  { %20 = sfence }
   0xf   :  { %21 = vsyncpa [#allocation11], 0 }
  0x10   :  { %23 = vsyncpa [#allocation11 + $0x1], 0 }
  0x11   :  { %24 = vsyncpa [#allocation14], 0 }
  0x12   :  { %26 = vsyncpa [#allocation14 + $0x1], 0 }
  0x13   :  { %27 = vsyncpa [#allocation17], 0 }
  0x14   :  { %28 = vsyncpa [#allocation20], 0 }
  0x15   :  { %29 = vsyncpa [#allocation12], 0 }
  0x16   :  { %31 = vsyncpa [#allocation12 + $0x1], 0  ;;  %s3615_s24 = smov 0   ;;  %s3617_s25 = smov 0  }
  0x17   :  { %s3619_s26 = smov 0   ;;  %s3621_s27 = smov 0  }
  0x18   :  { %s3623_s0 = smov 0   ;;  %s3625_s28 = smov 0  }
  0x19   :  { %s3627_s29 = smov 0   ;;  %s3629_s30 = smov 0  }
  0x1a   :  { %s3631_s13 = smov 0   ;;  %s3633_s14 = smov 0  }
  0x1b   :  { %s3635_s15 = smov 0  }
  0x1c LB: > { %4275 = sst [smem:[#allocation29_spill]] %s3480_s25  ;;  %s3669_s16 = sadd.s32 4294967295, %s3516_s15   ;;  %s3516_s15 = sphi %s3635_s15, %s37_s15   ;;  %s3512_s14 = sphi %s3633_s14, %s4328_s14   ;;  %s3508_s13 = sphi %s3631_s13, %s4327_s13   ;;  %s3504_s30 = sphi %s3629_s30, %s4326_s30   ;;  %s3500_s29 = sphi %s3627_s29, %s4325_s29   ;;  %s3496_s28 = sphi %s3625_s28, %s4324_s28   ;;  %s3492_s0 = sphi %s3623_s0, %s4323_s0   ;;  %s3488_s27 = sphi %s3621_s27, %s4322_s27   ;;  %s3484_s26 = sphi %s3619_s26, %s4321_s26   ;;  %s3480_s25 = sphi %s3617_s25, %s4320_s25   ;;  %s3476_s24 = sphi %s3615_s24, %s4318_s24  }
  0x1d   : > { %4276 = sst [smem:[#allocation30_spill]] %s3488_s27  ;;  %p104_p0 = scmp.ne.s32.totalorder %s3480_s25, %s3476_s24 }
  0x1e   : > { %4277 = sst [smem:[#allocation31_spill]] %s3500_s29  ;;  %p4258_p1 = scmp.eq.s32.totalorder %s3669_s16, 0 }
  0x1f   : > { %4278 = sst [smem:[#allocation32_spill]] %s3504_s30  ;;  %p2832_p2 = scmp.ge.s32.totalorder %s3516_s15, 1 }
  0x20   : > { %p341_p3 = scmp.lt.s32.totalorder %s3516_s15, 5  ;;  %p3677_p4 = por %p104_p0, %p4258_p1 }
  0x21   : > { %s3519_s19 = smov [#allocation16]   ;;  %p73_p8 = scmp.eq.s32.totalorder %s3516_s15, 0 }
  0x22   : > { %s4279_s17 = scalar_select %p3677_p4, 1, 0 }
  0x23   : > { %p3681_p5 = pnand %p2832_p2, %p341_p3  ;;  %s353_s20 = sshll.u32 %s3519_s19, 4  ;;  %s354_s20 = int_to_ptr.vmem [resolvable:$true] %s353_s20 }
  0x24   : > { %4280 = sst [smem:[#allocation33_spill]] %s4279_s17  ;;  %s3227_s22 = scalar_lea.vmem %s354_s20, 512 }
  0x25   : > { %p3049_p6 = pneg %p3681_p5  ;;  %p3228_p10 = scmp.ne.s32.totalorder %s354_s20, %s3227_s22 }
  0x26   : > { %p3235_p13 = scmp.lt.s32.totalorder %s354_s20, %s354_s20  ;;  %p3236_p0 = scmp.lt.s32.totalorder %s3227_s22, %s3227_s22 }
  0x27   : > { %p3689_p7 = pnand %p3049_p6, %p4258_p1 }
  0x28   : > { %p3237_p2 = por %p3236_p0, %p3235_p13 }
  0x29   : > { %p3218_p9 = pneg %p3689_p7 }
  0x2b   : > { %p3230_p11 = pnand %p3228_p10, %p3218_p9 }
  0x2d   : > { %p3231_p12 = pneg %p3230_p11 }
  0x2f   : > { %p3238_p3 = pnand %p3237_p2, %p3231_p12 }
  0x31   : > { %3241 = shalt.err (!%p3238_p3)
}
  0x32   : > { %s3520_s23 = smov 128   ;;  %s3521_s24 = smov 8  }
  0x33   : > { %s4283_s4 = sld [smem:[#allocation38_spill]]  ;;  %p98_p6 = scmp.ne.s32.totalorder %s3484_s26, %s3480_s25 }
  0x34   : > { %p4257_p10 = scmp.lt.s32.totalorder %s3516_s15, 4  ;;  %s428_s11 = sand.u32 1, %s3516_s15  }
  0x35   : > { %p100_p11 = por %p98_p6, %p73_p8  ;;  %s430_s10 = sand.u32 1, %s3484_s26  }
  0x36   : > { %s2899_s9 = sshll.u32 %s3512_s14, 8  ;;  %s2840_s5 = sshll.u32 %s430_s10, 4 }
  0x37   : > { %s4284_s2 = sld [smem:[#allocation37_spill]]  ;;  %p3721_p12 = pnand %p4257_p10, %p100_p11 }
  0x38   : > { %s3725_s22 = scalar_lea.sflag [#allocation14], %s428_s11  ;;  %s3522_s10 = smov [#allocation13]  }
  0x39   : > { %3052 = dma.hbm_to_vmem [thread:$0]  (!%p3689_p7), %s4283_s4, 512, %s354_s20, [#allocation17], %s3520_s23, %s3520_s23, %s3521_s24  }
  0x3a   : > { %s432_s20 = scalar_lea.vmem [#allocation13], %s2840_s5  ;;  %p3244_p13 = pneg %p3721_p12 }
  0x3b   : > { %s439_s19 = sshll.u32 %s432_s20, 4  ;;  %s3260_s7 = sshll.u32 %s3522_s10, 4  ;;  %s440_s19 = int_to_ptr.vmem [resolvable:$true] %s439_s19  ;;  %s3261_s7 = int_to_ptr.vmem [resolvable:$false] %s3260_s7 }
  0x3c   : > { %s3255_s12 = scalar_lea.vmem %s440_s19, 256  ;;  %p3263_p6 = scmp.lt.s32.totalorder %s440_s19, %s3261_s7 }
  0x3d   : > { %s438_s29 = scalar_lea.hbm %s4284_s2, %s2899_s9  ;;  %p3256_p0 = scmp.ne.s32.totalorder %s440_s19, %s3255_s12 }
  0x3e   : > { %s3262_s9 = scalar_lea.vmem %s3261_s7, 512 }
  0x3f   : > { %p3258_p2 = pnand %p3256_p0, %p3244_p13  ;;  %p3264_p11 = scmp.lt.s32.totalorder %s3262_s9, %s3255_s12 }
  0x41   : > { %p3259_p3 = pneg %p3258_p2  ;;  %p3265_p10 = por %p3264_p11, %p3263_p6 }
  0x43   : > { %p3266_p1 = pnand %p3265_p10, %p3259_p3 }
  0x45   : > { %3269 = shalt.err (!%p3266_p1)
}
  0x46   : > { %3065 = dma.hbm_to_vmem [thread:$0]  (!%p3721_p12), %s438_s29, 256, %s440_s19, %s3725_s22, %s3520_s23, %s3520_s23, %s3521_s24  }
  0x47   : > { %s3523_s5 = smov [#allocation18]   ;;  %s3524_s30 = smov [#allocation19]  }
  0x48   : > { %s369_s11 = sshll.u32 %s3523_s5, 4  ;;  %s385_s20 = sshll.u32 %s3524_s30, 4  ;;  %s370_s11 = int_to_ptr.vmem [resolvable:$true] %s369_s11  ;;  %s386_s20 = int_to_ptr.vmem [resolvable:$true] %s385_s20 }
  0x49   : > { %s3281_s10 = scalar_lea.vmem %s370_s11, 512  ;;  %p3289_p1 = scmp.lt.s32.totalorder %s370_s11, %s370_s11 }
  0x4a   : > { %p3282_p13 = scmp.ne.s32.totalorder %s370_s11, %s3281_s10  ;;  %p3290_p2 = scmp.lt.s32.totalorder %s3281_s10, %s3281_s10 }
  0x4c   : > { %p3284_p0 = pnand %p3282_p13, %p3218_p9  ;;  %p3291_p3 = por %p3290_p2, %p3289_p1 }
  0x4e   : > { %p3285_p10 = pneg %p3284_p0 }
  0x50   : > { %p3292_p6 = pnand %p3291_p3, %p3285_p10 }
  0x52   : > { %3295 = shalt.err (!%p3292_p6)
}
  0x53   : > { %s4286_s6 = sld [smem:[#allocation40_spill]]  ;;  %s3307_s17 = scalar_lea.vmem %s386_s20, 512 }
  0x54   : > { %p3308_p12 = scmp.ne.s32.totalorder %s386_s20, %s3307_s17  ;;  %p3315_p0 = scmp.lt.s32.totalorder %s386_s20, %s386_s20 }
  0x55   : > { %p3316_p10 = scmp.lt.s32.totalorder %s3307_s17, %s3307_s17 }
  0x56   : > { %p3310_p11 = pnand %p3308_p12, %p3218_p9 }
  0x57   : > { %p3317_p1 = por %p3316_p10, %p3315_p0 }
  0x58   : > { %p3311_p13 = pneg %p3310_p11 }
  0x59   : > { %3055 = dma.hbm_to_vmem [thread:$0]  (!%p3689_p7), %s4286_s6, 512, %s370_s11, [#allocation17], %s3520_s23, %s3520_s23, %s3521_s24  }
  0x5a   : > { %p3318_p2 = pnand %p3317_p1, %p3311_p13 }
  0x5c   : > { %3321 = shalt.err (!%p3318_p2)
}
  0x5d   : > { %s4287_s8 = sld [smem:[#allocation42_spill]]  ;;  %s2831_s21 = sadd.s32 4294967294, %s3516_s15  }
  0x5e   : > { %s52_s9 = sadd.s32 1, %s3508_s13  ;;  %s56_s5 = sadd.s32 1, %s3512_s14 }
  0x5f   : > { %p54_p9 = scmp.ge.s32.totalorder %s52_s9, 2  ;;  %s65_s11 = sadd.s32 1, %s3496_s28 }
  0x60   : > { %p72_p3 = scmp.ne.s32.totalorder %s3496_s28, %s3492_s0  ;;  %p78_p6 = scmp.ne.s32.totalorder %s3492_s0, %s3488_s27 }
  0x61   : > { %s4330_s9 = smov (%p54_p9, %s52_s9), 0  ;;  %s4332_s5 = smov (!%p54_p9, %s56_s5), %s3512_s14 }
  0x62   : > { %4288 = sst [smem:[#allocation34_spill]] %s4330_s9  ;;  %s61_s30 = ssub.s32 %s3508_s13, %s4330_s9 }
  0x63   : > { %3058 = dma.hbm_to_vmem [thread:$0]  (!%p3689_p7), %s4287_s8, 512, %s386_s20, [#allocation20], %s3520_s23, %s3520_s23, %s3521_s24  }
  0x64   : > { %p3772_p12 = por %p73_p8, %p72_p3  ;;  %p58_p7 = scmp.ge.s32.totalorder %s4332_s5, 2 }
  0x65   : > { %p4290_p11 = scmp.eq.s32.totalorder %s3669_s16, 0  ;;  %p328_p0 = scmp.eq.s32.totalorder %s3669_s16, 3 }
  0x66   : > { %p334_p10 = scmp.eq.s32.totalorder %s2831_s21, 3  ;;  %s4334_s5 = smov (%p58_p7, %s4332_s5), 0 }
  0x67   : > { %p3778_p13 = por %p4290_p11, %p78_p6  ;;  %p3785_p1 = por %p328_p0, %p72_p3 }
  0x68   : > { %p3789_p8 = por %p334_p10, %p78_p6  ;;  %s60_s12 = ssub.s32 %s3512_s14, %s4334_s5 }
  0x69   : > { %s4292_s20 = scalar_select %p3785_p1, 1, 0 }
  0x6a   : > { %s4294_s10 = scalar_select %p3789_p8, 1, 0 }
  0x6b   : > { %4293 = sst [smem:[#allocation35_spill]] %s4292_s20  ;;  %s408_s29 = sand.u32 1, %s3496_s28  }
  0x6c   : > { %4295 = sst [smem:[#allocation36_spill]] %s4294_s10  ;;  %s62_s17 = sor.u32 %s61_s30, %s60_s12 }
  0x6d   : > { %p89_p2 = scmp.eq.s32.totalorder %s60_s12, 0  ;;  %p63_p9 = scmp.eq.s32.totalorder %s62_s17, 0 }
  0x6e   : > { %s4296_s19 = sadd.s32 1, %s3484_s26  ;;  %s2837_s2 = sshll.u32 %s408_s29, 3 }
  0x6f   : > { %s3799_s7 = scalar_select %p89_p2, %s3484_s26, %s4296_s19  }
  0x70   : > { %s3802_s21 = scalar_select %p63_p9, %s3496_s28, %s65_s11  }
  0x71   : > { %s2838_s4 = sshll.u32 %s3512_s14, 1  ;;  %s412_s9 = scalar_lea.vmem [#allocation10], %s2837_s2 }
  0x72   : > { %s417_s6 = sadd.s32 %s3508_s13, %s2838_s4  ;;  %s421_s27 = sshll.u32 %s412_s9, 4  ;;  %s422_s27 = int_to_ptr.vmem [resolvable:$true] %s421_s27 }
  0x73   : > { %s2839_s8 = sshll.u32 %s417_s6, 7  ;;  %p4297_p3 = scmp.lt.s32.totalorder %s3516_s15, 4 }
  0x74   : > { %s419_s25 = scalar_lea.hbm %s4242_s1, %s2839_s8  ;;  %s3820_s4 = scalar_lea.hbm %s4244_s3, %s2839_s8 }
  0x75   : > { %p3813_p6 = pnand %p4297_p3, %p3772_p12  ;;  %s453_s6 = scalar_lea.vmem [#allocation15], %s2837_s2 }
  0x76   : > { %s463_s9 = sshll.u32 %s453_s6, 4  ;;  %s409_s20 = scalar_lea.sflag [#allocation11], %s408_s29  ;;  %s3822_s9 = int_to_ptr.vmem [resolvable:$true] %s463_s9 }
  0x77   : > { %p3324_p7 = pneg %p3813_p6  ;;  %s3335_s23 = scalar_lea.vmem %s422_s27, 128 }
  0x78   : > { %p3336_p11 = scmp.ne.s32.totalorder %s422_s27, %s3335_s23  ;;  %s3525_s10 = smov [#allocation10]  }
  0x79   : > { %s3340_s17 = sshll.u32 %s3525_s10, 4  ;;  %s3341_s17 = int_to_ptr.vmem [resolvable:$false] %s3340_s17 }
  0x7a   : > { %p3338_p12 = pnand %p3336_p11, %p3324_p7  ;;  %s3342_s19 = scalar_lea.vmem %s3341_s17, 256 }
  0x7b   : > { %p3343_p10 = scmp.lt.s32.totalorder %s422_s27, %s3341_s17  ;;  %p3344_p2 = scmp.lt.s32.totalorder %s3342_s19, %s3335_s23 }
  0x7c   : > { %p3339_p0 = pneg %p3338_p12 }
  0x7d   : > { %p3345_p9 = por %p3344_p2, %p3343_p10 }
  0x7f   : > { %p3346_p3 = pnand %p3345_p9, %p3339_p0 }
  0x81   : > { %3349 = shalt.err (!%p3346_p3)
}
  0x82   : > { %3062 = dma.hbm_to_vmem [thread:$0]  (!%p3813_p6), %s419_s25, 128, %s422_s27, %s409_s20  }
  0x83   : > { %s3363_s2 = scalar_lea.vmem %s3822_s9, 128  ;;  %s3526_s8 = smov [#allocation15]  }
  0x84   : > { %p3364_p8 = scmp.ne.s32.totalorder %s3822_s9, %s3363_s2  ;;  %s3368_s29 = sshll.u32 %s3526_s8, 4  ;;  %s3369_s29 = int_to_ptr.vmem [resolvable:$false] %s3368_s29 }
  0x85   : > { %s3370_s12 = scalar_lea.vmem %s3369_s29, 256  ;;  %p3371_p10 = scmp.lt.s32.totalorder %s3822_s9, %s3369_s29 }
  0x86   : > { %p3366_p11 = pnand %p3364_p8, %p3324_p7  ;;  %p3372_p0 = scmp.lt.s32.totalorder %s3370_s12, %s3363_s2 }
  0x88   : > { %p3367_p12 = pneg %p3366_p11  ;;  %p3373_p2 = por %p3372_p0, %p3371_p10 }
  0x8a   : > { %p3374_p9 = pnand %p3373_p2, %p3367_p12 }
  0x8c   : > { %3377 = shalt.err (!%p3374_p9)
}
  0x8d   : > { %3068 = dma.hbm_to_vmem [thread:$0]  (!%p3813_p6), %s3820_s4, 128, %s3822_s9, %s3725_s22  }
  0x8e   : > { %472 = sbr.rel (%p3681_p5) target bundleno = 2482 (0x9b2), region = 64  ;;  %s3845_s25 = sand.u32 (!%p3681_p5), 1, %s3492_s0  }
  0x8f   : > { %s3848_s27 = sshll.u32 (!%p3681_p5), %s3845_s25, 3  ;;  %s475_s11 = scalar_lea.sflag (!%p3681_p5), [#allocation11], %s3845_s25 }
  0x90   : > { %s478_s6 = scalar_lea.vmem (!%p3681_p5), [#allocation10], %s3848_s27 }
  0x93   : > { %3451 = dma.done.wait (%p3778_p13), %s475_s11, 128  }
  0x94   : > { %3453 = vsyncadd (%p3778_p13), %s475_s11, 4294967168  ;;  %s4299_s22 = sld [smem:[#allocation29_spill]]  ;;  %s483_s30 = sand.u32 1, %s3669_s16  }
  0x95   : > { %s484_s20 = scalar_lea.sflag [#allocation14], %s483_s30 }
  0x9a   : > { %s485_s4 = sand.u32 1, %s4299_s22  }
  0x9b   : > { %s2848_s9 = sshll.u32 %s485_s4, 4 }
  0x9c   : > { %s487_s23 = scalar_lea.vmem [#allocation13], %s2848_s9 }
  0x9d   : > { %3455 = dma.done.wait (%p3677_p4), %s484_s20, 256  }
  0x9e   : > { %3457 = vsyncadd (%p3677_p4), %s484_s20, 4294967040  ;;  %s496_s10 = scalar_lea.vmem [#allocation15], %s3848_s27 }
  0x9f   : > { %3459 = dma.done.wait (%p3778_p13), %s484_s20, 128  }
  0xa0   : > { %3461 = vsyncadd (%p3778_p13), %s484_s20, 4294967168  ;;  %p4301_p5 = scmp.eq.s32.totalorder %s3669_s16, 0 }
  0xa2   : > { %3463 = dma.done.wait (%p4301_p5), [#allocation17], 1024   ;;  %p4302_p8 = pmov %p4301_p5 }
  0xa3   : > { %p4303_p6 = pmov %p4301_p5 }
  0xa4   : > { %3465 = vsyncadd (%p4302_p8), [#allocation17], 4294966272 }
  0xa5   : > { %3467 = dma.done.wait (%p4303_p6), [#allocation20], 512   ;;  %p4304_p7 = pmov %p4301_p5 }
  0xa6   : > { %s556_s17 = scalar_lea.vmem [#allocation21], %s3848_s27  ;;  %s4305_s19 = sld [smem:[#allocation31_spill]] }
  0xa7   : > { %3469 = vsyncadd (%p4304_p7), [#allocation20], 4294966784 }
  0xac   : > { %p2854_p4 = scmp.ne.s32.totalorder %s4305_s19, 0 }
  0xad   : > { %s4306_s2 = sld [smem:[#allocation41_spill]] (!%p2854_p4)  ;;  %s3527_s8 = smov (!%p2854_p4), 112  }
  0xae   : > { %560 = sbr.rel (%p2854_p4) target bundleno = 646 (0x286), region = 92  ;;  %s3528_s29 = smov (!%p2854_p4), 120  }
  0xaf   : > { %s3529_s12 = smov (!%p2854_p4), 104   ;;  %s3530_s11 = smov (!%p2854_p4), 96  }
  0xb3   : > { %v568_v0 = vld [vmem:[#allocation18 + $0x18] sm:$0xff]  ;;  %v567_v1 = vld [vmem:[#allocation18 + $0x10] sm:$0xff]  ;;  %vm576_vm0 = vcmask 261120   ;;  %v566_v3 = vld [vmem:[#allocation18 + $0x8] sm:$0xff]  ;;  %v3531_v11 = vmov 1983009808   ;;  %v683_v13 = vlaneseq }
  0xb4   : > { %2940 = vmatprep.subr.mxu0 %v568_v0  ;;  %v563_v2 = vld [vmem:[%s487_s23] sm:$0xff]  ;;  %v564_v5 = vld [vmem:[%s487_s23 + $0x8] sm:$0xff]  ;;  %v681_v12 = vunpack.c.l.s4 %v3531_v11  ;;  %v3532_v18 = vmov 1934713408   ;;  %vm1112_vm1 = vcmask 64512  }
  0xb5   : > { %2941 = vmatpush3.msra.mxu0 %v568_v0  ;;  %2948 = vmatprep.mubr.msk.f32.mxu0 %vm576_vm0, %v563_v2  ;;  %v565_v4 = vld [vmem:[#allocation18] sm:$0xff]  ;;  %v2855_v6 = vld [vmem:[%s4306_s2] ss:$0 sm:$0xff]  ;;  %v684_v17 = vshrl.u32 %v683_v13, 7  ;;  %v713_v19 = vunpack.c.l.s4 %v3532_v18 }
  0xb6   : > { %2942 = vmatprep.subr.mxu0 %v567_v1  ;;  %v682_v16 = vunpack.c.0.s8 %v681_v12 }
  0xb7   : > { %2943 = vmatpush3.msra.mxu0 %v567_v1  ;;  %v714_v25 = vunpack.c.0.s8 %v713_v19 }
  0xb8   : > { %2944 = vmatprep.subr.mxu0 %v566_v3  ;;  %v3885_v22 = vsub.s32 %v682_v16, %v684_v17 }
  0xb9   : > { %2945 = vmatpush3.msra.mxu0 %v566_v3  ;;  %v3890_v36 = vsub.s32 %v714_v25, %v684_v17 }
  0xba   : > { %2946 = vmatprep.subr.mxu0 %v565_v4 }
  0xbb   : > { %2947 = vmatpush3.msra.mxu0 %v565_v4 }
  0xbc   : > { %2949 = vmatmul.mubr.msk.f32.vlgmr.msra.gmra.mxu0 %vm576_vm0, %v564_v5 }
 0x17c   : > { %v2950_v7 = vpop.f32.mrf.mxu0 }
 0x17d   : > { %v655_v8 = vadd.f32 %v2950_v7, %v2855_v6 }
 0x17e   : > { %v649_v9 = vpop.f32.mrf.mxu0 }
 0x17f   : > { %668 = vrot.lane.b32.xlu1 %v655_v8, %s3527_s8  ;;  %662 = vrot.lane.b32.xlu0 %v655_v8, %s3528_s29  ;;  %v650_v10 = vadd.f32 %v2855_v6, %v649_v9 }
 0x183   : > { %666 = vrot.lane.b32.xlu1 %v650_v10, %s3527_s8  ;;  %660 = vrot.lane.b32.xlu0 %v650_v10, %s3528_s29 }
 0x187   : > { %674 = vrot.lane.b32.xlu1 %v655_v8, %s3529_s12  ;;  %672 = vrot.lane.b32.xlu0 %v650_v10, %s3529_s12 }
 0x18b   : > { %816 = vrot.lane.b32.xlu1 %v655_v8, %s3530_s11  ;;  %814 = vrot.lane.b32.xlu0 %v650_v10, %s3530_s11 }
 0x1f1   : > { %v669_v14 = vpop.permute.xlu1 %668  ;;  %v663_v15 = vpop.permute.xlu0 %662 }
 0x1f2   : > { %820 = vrot.lane.b32.xlu1 %v663_v15, %s3530_s11  ;;  %v746_v23 = vcombine.low %v655_v8, %v669_v14  ;;  %v747_v24 = vcombine.high %v655_v8, %v669_v14 }
 0x1f4   : > { %v754_v34 = vrot.slane %v746_v23, %v3885_v22  ;;  %v761_v35 = vrot.slane %v747_v24, %v3885_v22 }
 0x1f5   : > { %v667_v20 = vpop.permute.xlu1 %666  ;;  %v661_v21 = vpop.permute.xlu0 %660 }
 0x1f6   : > { %824 = vrot.lane.b32.xlu1 %v669_v14, %s3530_s11  ;;  %818 = vrot.lane.b32.xlu0 %v661_v21, %s3530_s11  ;;  %v678_v26 = vcombine.low %v650_v10, %v667_v20  ;;  %v679_v27 = vcombine.high %v650_v10, %v667_v20 }
 0x1f8   : > { %v686_v41 = vrot.slane %v678_v26, %v3885_v22  ;;  %v693_v42 = vrot.slane %v679_v27, %v3885_v22 }
 0x1f9   : > { %v675_v28 = vpop.permute.xlu1 %674  ;;  %v673_v29 = vpop.permute.xlu0 %672 }
 0x1fa   : > { %v762_v30 = vcombine.low %v663_v15, %v675_v28  ;;  %v763_v31 = vcombine.high %v663_v15, %v675_v28  ;;  %v694_v32 = vcombine.low %v661_v21, %v673_v29  ;;  %v695_v33 = vcombine.high %v661_v21, %v673_v29  ;;  %828 = vrot.lane.b32.xlu1 %v675_v28, %s3530_s11 }
 0x1fb   : > { %822 = vrot.lane.b32.xlu0 %v667_v20, %s3530_s11 }
 0x1fc   : > { %v770_v37 = vrot.slane %v762_v30, %v3885_v22  ;;  %v777_v38 = vrot.slane %v763_v31, %v3885_v22  ;;  %v702_v39 = vrot.slane %v694_v32, %v3885_v22  ;;  %v709_v40 = vrot.slane %v695_v33, %v3885_v22 }
 0x1fe   : > { %v778_v43 = vcombine.low %v754_v34, %v770_v37  ;;  %v779_v44 = vcombine.high %v754_v34, %v770_v37  ;;  %v794_v45 = vcombine.low %v761_v35, %v777_v38  ;;  %v795_v46 = vcombine.high %v761_v35, %v777_v38  ;;  %v817_v37 = vpop.permute.xlu1 %816  ;;  %v815_v38 = vpop.permute.xlu0 %814 }
 0x1ff   : > { %v710_v47 = vcombine.low %v686_v41, %v702_v39  ;;  %v711_v48 = vcombine.high %v686_v41, %v702_v39  ;;  %v726_v49 = vcombine.low %v693_v42, %v709_v40  ;;  %v727_v50 = vcombine.high %v693_v42, %v709_v40  ;;  %826 = vrot.lane.b32.xlu0 %v673_v29, %s3530_s11 }
 0x200   : > { %v786_v51 = vrot.slane %v778_v43, %v3890_v36  ;;  %v793_v52 = vrot.slane %v779_v44, %v3890_v36  ;;  %v802_v53 = vrot.slane %v794_v45, %v3890_v36  ;;  %v809_v54 = vrot.slane %v795_v46, %v3890_v36 }
 0x201   : > { %v718_v55 = vrot.slane %v710_v47, %v3890_v36  ;;  %v725_v56 = vrot.slane %v711_v48, %v3890_v36  ;;  %v734_v57 = vrot.slane %v726_v49, %v3890_v36  ;;  %v741_v58 = vrot.slane %v727_v50, %v3890_v36 }
 0x202   : > { %v1042_v59 = vcombine.low %v786_v51, %v793_v52  ;;  %v2860_v60 = vcombine.high %v786_v51, %v793_v52  ;;  %v1058_v61 = vcombine.low %v802_v53, %v809_v54  ;;  %v2861_v62 = vcombine.high %v802_v53, %v809_v54 }
 0x203   : > { %v974_v63 = vcombine.low %v718_v55, %v725_v56  ;;  %v2858_v0 = vcombine.high %v718_v55, %v725_v56  ;;  %v990_v1 = vcombine.low %v734_v57, %v741_v58  ;;  %v2859_v2 = vcombine.high %v734_v57, %v741_v58 }
 0x204   : > { %v1049_v3 = vrot.slane %v1042_v59, %v3885_v22  ;;  %v1057_v4 = vrot.slane %v2860_v60, %v3885_v22  ;;  %v1065_v5 = vrot.slane %v1058_v61, %v3885_v22  ;;  %v1073_v6 = vrot.slane %v2861_v62, %v3885_v22 }
 0x205   : > { %v981_v7 = vrot.slane %v974_v63, %v3885_v22  ;;  %v989_v8 = vrot.slane %v2858_v0, %v3885_v22  ;;  %v997_v9 = vrot.slane %v990_v1, %v3885_v22  ;;  %v1005_v10 = vrot.slane %v2859_v2, %v3885_v22 }
 0x206   : > { %v1074_v11 = vcombine.low %v1049_v3, %v1057_v4  ;;  %v1075_v12 = vcombine.high %v1049_v3, %v1057_v4  ;;  %v1090_v13 = vcombine.low %v1065_v5, %v1073_v6  ;;  %v1091_v14 = vcombine.high %v1065_v5, %v1073_v6 }
 0x207   : > { %v1006_v15 = vcombine.low %v981_v7, %v989_v8  ;;  %v1007_v16 = vcombine.high %v981_v7, %v989_v8  ;;  %v1022_v17 = vcombine.low %v997_v9, %v1005_v10  ;;  %v1023_v18 = vcombine.high %v997_v9, %v1005_v10 }
 0x208   : > { %v1082_v19 = vrot.slane %v1074_v11, %v3890_v36  ;;  %v1089_v20 = vrot.slane %v1075_v12, %v3890_v36  ;;  %v1098_v21 = vrot.slane %v1090_v13, %v3890_v36  ;;  %v1105_v23 = vrot.slane %v1091_v14, %v3890_v36 }
 0x209   : > { %v1014_v24 = vrot.slane %v1006_v15, %v3890_v36  ;;  %v1021_v25 = vrot.slane %v1007_v16, %v3890_v36  ;;  %v1030_v26 = vrot.slane %v1022_v17, %v3890_v36  ;;  %v1037_v27 = vrot.slane %v1023_v18, %v3890_v36 }
 0x20a   : > { %v1106_v28 = vcombine.low %v1082_v19, %v1098_v21  ;;  %v1107_v29 = vcombine.high %v1082_v19, %v1098_v21  ;;  %v1108_v30 = vcombine.low %v1089_v20, %v1105_v23  ;;  %v1109_v31 = vcombine.high %v1089_v20, %v1105_v23 }
 0x20b   : > { %v1038_v32 = vcombine.low %v1014_v24, %v1030_v26  ;;  %v1039_v33 = vcombine.high %v1014_v24, %v1030_v26  ;;  %v1040_v34 = vcombine.low %v1021_v25, %v1037_v27  ;;  %v1041_v35 = vcombine.high %v1021_v25, %v1037_v27 }
 0x20c   : > { %1114 = vst.msk [vmem:[#allocation2 + $0x8] sm:$0xff] %vm1112_vm1, %v1106_v28  ;;  %1116 = vst.msk [vmem:[#allocation2 + $0x18] sm:$0xff] %vm1112_vm1, %v1107_v29 }
 0x20d   : > { %1118 = vst.msk [vmem:[#allocation2 + $0x28] sm:$0xff] %vm1112_vm1, %v1108_v30  ;;  %1120 = vst.msk [vmem:[#allocation2 + $0x38] sm:$0xff] %vm1112_vm1, %v1109_v31 }
 0x20e   : > { %1113 = vst.msk [vmem:[#allocation2] sm:$0xff] %vm1112_vm1, %v1038_v32  ;;  %1115 = vst.msk [vmem:[#allocation2 + $0x10] sm:$0xff] %vm1112_vm1, %v1039_v33 }
 0x20f   : > { %1117 = vst.msk [vmem:[#allocation2 + $0x20] sm:$0xff] %vm1112_vm1, %v1040_v34  ;;  %1119 = vst.msk [vmem:[#allocation2 + $0x30] sm:$0xff] %vm1112_vm1, %v1041_v35 }
 0x264   : > { %v821_v39 = vpop.permute.xlu1 %820 }
 0x268   : > { %v825_v40 = vpop.permute.xlu1 %824  ;;  %v819_v41 = vpop.permute.xlu0 %818 }
 0x269   : > { %v906_v42 = vcombine.low %v817_v37, %v825_v40  ;;  %v907_v43 = vcombine.high %v817_v37, %v825_v40 }
 0x26b   : > { %v914_v48 = vrot.slane %v906_v42, %v3885_v22  ;;  %v921_v49 = vrot.slane %v907_v43, %v3885_v22 }
 0x26c   : > { %v829_v44 = vpop.permute.xlu1 %828 }
 0x26d   : > { %v922_v45 = vcombine.low %v821_v39, %v829_v44  ;;  %v923_v46 = vcombine.high %v821_v39, %v829_v44  ;;  %v823_v47 = vpop.permute.xlu0 %822 }
 0x26e   : > { %v838_v52 = vcombine.low %v815_v38, %v823_v47  ;;  %v839_v53 = vcombine.high %v815_v38, %v823_v47 }
 0x26f   : > { %v930_v50 = vrot.slane %v922_v45, %v3885_v22  ;;  %v937_v51 = vrot.slane %v923_v46, %v3885_v22 }
 0x270   : > { %v846_v1 = vrot.slane %v838_v52, %v3885_v22  ;;  %v853_v2 = vrot.slane %v839_v53, %v3885_v22 }
 0x271   : > { %v938_v54 = vcombine.low %v914_v48, %v930_v50  ;;  %v939_v55 = vcombine.high %v914_v48, %v930_v50  ;;  %v954_v56 = vcombine.low %v921_v49, %v937_v51  ;;  %v955_v57 = vcombine.high %v921_v49, %v937_v51  ;;  %v827_v58 = vpop.permute.xlu0 %826 }
 0x272   : > { %v854_v59 = vcombine.low %v819_v41, %v827_v58  ;;  %v855_v60 = vcombine.high %v819_v41, %v827_v58 }
 0x273   : > { %v946_v61 = vrot.slane %v938_v54, %v3890_v36  ;;  %v953_v62 = vrot.slane %v939_v55, %v3890_v36  ;;  %v962_v63 = vrot.slane %v954_v56, %v3890_v36  ;;  %v969_v0 = vrot.slane %v955_v57, %v3890_v36 }
 0x274   : > { %v862_v3 = vrot.slane %v854_v59, %v3885_v22  ;;  %v869_v4 = vrot.slane %v855_v60, %v3885_v22 }
 0x275   : > { %v1189_v5 = vcombine.low %v946_v61, %v953_v62  ;;  %v2864_v6 = vcombine.high %v946_v61, %v953_v62  ;;  %v1205_v7 = vcombine.low %v962_v63, %v969_v0  ;;  %v2865_v8 = vcombine.high %v962_v63, %v969_v0 }
 0x276   : > { %v870_v9 = vcombine.low %v846_v1, %v862_v3  ;;  %v871_v10 = vcombine.high %v846_v1, %v862_v3  ;;  %v886_v11 = vcombine.low %v853_v2, %v869_v4  ;;  %v887_v12 = vcombine.high %v853_v2, %v869_v4 }
 0x277   : > { %v1196_v13 = vrot.slane %v1189_v5, %v3885_v22  ;;  %v1204_v14 = vrot.slane %v2864_v6, %v3885_v22  ;;  %v1212_v15 = vrot.slane %v1205_v7, %v3885_v22  ;;  %v1220_v16 = vrot.slane %v2865_v8, %v3885_v22 }
 0x278   : > { %v878_v17 = vrot.slane %v870_v9, %v3890_v36  ;;  %v885_v18 = vrot.slane %v871_v10, %v3890_v36  ;;  %v894_v19 = vrot.slane %v886_v11, %v3890_v36  ;;  %v901_v20 = vrot.slane %v887_v12, %v3890_v36 }
 0x279   : > { %v1221_v21 = vcombine.low %v1196_v13, %v1204_v14  ;;  %v1222_v23 = vcombine.high %v1196_v13, %v1204_v14  ;;  %v1237_v24 = vcombine.low %v1212_v15, %v1220_v16  ;;  %v1238_v25 = vcombine.high %v1212_v15, %v1220_v16 }
 0x27a   : > { %v1121_v26 = vcombine.low %v878_v17, %v885_v18  ;;  %v2862_v27 = vcombine.high %v878_v17, %v885_v18  ;;  %v1137_v28 = vcombine.low %v894_v19, %v901_v20  ;;  %v2863_v29 = vcombine.high %v894_v19, %v901_v20 }
 0x27b   : > { %v1229_v30 = vrot.slane %v1221_v21, %v3890_v36  ;;  %v1236_v31 = vrot.slane %v1222_v23, %v3890_v36  ;;  %v1245_v32 = vrot.slane %v1237_v24, %v3890_v36  ;;  %v1252_v33 = vrot.slane %v1238_v25, %v3890_v36 }
 0x27c   : > { %v1128_v34 = vrot.slane %v1121_v26, %v3885_v22  ;;  %v1136_v35 = vrot.slane %v2862_v27, %v3885_v22  ;;  %v1144_v37 = vrot.slane %v1137_v28, %v3885_v22  ;;  %v1152_v38 = vrot.slane %v2863_v29, %v3885_v22 }
 0x27d   : > { %v1253_v39 = vcombine.low %v1229_v30, %v1245_v32  ;;  %v1254_v40 = vcombine.high %v1229_v30, %v1245_v32  ;;  %v1255_v41 = vcombine.low %v1236_v31, %v1252_v33  ;;  %v1256_v42 = vcombine.high %v1236_v31, %v1252_v33 }
 0x27e   : > { %v1153_v43 = vcombine.low %v1128_v34, %v1136_v35  ;;  %v1154_v44 = vcombine.high %v1128_v34, %v1136_v35  ;;  %v1169_v45 = vcombine.low %v1144_v37, %v1152_v38  ;;  %v1170_v46 = vcombine.high %v1144_v37, %v1152_v38 }
 0x27f   : > { %1259 = vst.msk [vmem:[#allocation3 + $0x8] sm:$0xff] %vm1112_vm1, %v1253_v39  ;;  %1261 = vst.msk [vmem:[#allocation3 + $0x18] sm:$0xff] %vm1112_vm1, %v1254_v40 }
 0x280   : > { %1263 = vst.msk [vmem:[#allocation3 + $0x28] sm:$0xff] %vm1112_vm1, %v1255_v41  ;;  %1265 = vst.msk [vmem:[#allocation3 + $0x38] sm:$0xff] %vm1112_vm1, %v1256_v42  ;;  %v1161_v47 = vrot.slane %v1153_v43, %v3890_v36  ;;  %v1168_v22 = vrot.slane %v1154_v44, %v3890_v36  ;;  %v1177_v48 = vrot.slane %v1169_v45, %v3890_v36 }
 0x281   : > { %v1184_v49 = vrot.slane %v1170_v46, %v3890_v36 }
 0x282   : > { %v1185_v50 = vcombine.low %v1161_v47, %v1177_v48  ;;  %v1186_v51 = vcombine.high %v1161_v47, %v1177_v48 }
 0x283   : > { %v1187_v52 = vcombine.low %v1168_v22, %v1184_v49  ;;  %v1188_v53 = vcombine.high %v1168_v22, %v1184_v49 }
 0x284   : > { %1258 = vst.msk [vmem:[#allocation3] sm:$0xff] %vm1112_vm1, %v1185_v50  ;;  %1260 = vst.msk [vmem:[#allocation3 + $0x10] sm:$0xff] %vm1112_vm1, %v1186_v51 }
 0x285   : > { %1262 = vst.msk [vmem:[#allocation3 + $0x20] sm:$0xff] %vm1112_vm1, %v1187_v52  ;;  %1264 = vst.msk [vmem:[#allocation3 + $0x30] sm:$0xff] %vm1112_vm1, %v1188_v53 }
 0x286 PF: > { %vm1270_vm2 = vcmask 60416   ;;  %v1282_v54 = vld [vmem:[#allocation16 + $0x18] sm:$0xff]  ;;  %v3533_v55 = vmov -1e+30   ;;  %v3534_v36 = vmov 0.0   ;;  %v1281_v56 = vld [vmem:[#allocation16 + $0x10] sm:$0xff]  ;;  %v1379_v2 = vlaneseq }
 0x287   : > { %1271 = vst.msk [vmem:[#allocation5] sm:$0xf] %vm1270_vm2, %v3533_v55  ;;  %1272 = vst.msk [vmem:[#allocation6] sm:$0xf] %vm1270_vm2, %v3534_v36  ;;  %2951 = vmatprep.subr.mxu0 %v3534_v36  ;;  %vm3535_vm3 = vmmov 0   ;;  %v1280_v57 = vld [vmem:[#allocation16 + $0x8] sm:$0xff] }
 0x288   : > { %2952 = vmatpush3.msra.mxu0 %v1282_v54  ;;  %2959 = vmatprep.mubr.msk.f32.mxu0 %vm3535_vm3, %v3534_v36  ;;  %v1279_v58 = vld [vmem:[#allocation16] sm:$0xff]  ;;  %vm1290_vm4 = vcmask 261120   ;;  %s4307_s22 = sld [smem:[#allocation32_spill]]  ;;  %vm1273_vm5 = vcmask 64512   ;;  %s3536_s20 = smov 104   ;;  %v4003_v6 = vshrl.u32 %v1379_v2, 7 }
 0x289   : > { %2953 = vmatprep.subr.mxu0 %v3534_v36  ;;  %v1278_v59 = vld [vmem:[%s478_s6] sm:$0xff]  ;;  %s4308_s18 = sld [smem:[#allocation31_spill]]  ;;  %1274 = vst.msk [vmem:[#allocation7] sm:$0xff] %vm1273_vm5, %v3534_v36  ;;  %1275 = vst.msk [vmem:[#allocation7 + $0x8] sm:$0xff] %vm1273_vm5, %v3534_v36  ;;  %s3537_s23 = smov 120  }
 0x28a   : > { %2954 = vmatpush3.msra.mxu0 %v1281_v56  ;;  %1276 = vst.msk [vmem:[#allocation7 + $0x10] sm:$0xff] %vm1273_vm5, %v3534_v36  ;;  %1277 = vst.msk [vmem:[#allocation7 + $0x18] sm:$0xff] %vm1273_vm5, %v3534_v36  ;;  %s4309_s9 = sld [smem:[#allocation39_spill]]  ;;  %s3538_s19 = smov 112   ;;  %v3539_v0 = vmov 1983009808  }
 0x28b   : > { %2955 = vmatprep.subr.mxu0 %v3534_v36  ;;  %v1377_v1 = vunpack.c.l.s4 %v3539_v0  ;;  %v3540_v3 = vmov 1934713408  }
 0x28c   : > { %2956 = vmatpush3.msra.mxu0 %v1280_v57  ;;  %v1409_v4 = vunpack.c.l.s4 %v3540_v3 }
 0x28d   : > { %2957 = vmatprep.subr.mxu0 %v3534_v36  ;;  %v1378_v5 = vunpack.c.0.s8 %v1377_v1 }
 0x28e   : > { %2958 = vmatpush3.msra.mxu0 %v1279_v58  ;;  %s2870_s16 = sshll.u32 %s4307_s22, 1  ;;  %v1410_v9 = vunpack.c.0.s8 %v1409_v4 }
 0x28f   : > { %2960 = vmatmul.mubr.msk.f32.vlgmr.msra.gmra.mxu0 %vm1290_vm4, %v1278_v59  ;;  %s3997_s24 = sadd.s32 %s4308_s18, %s2870_s16  ;;  %v4006_v10 = vsub.s32 %v1378_v5, %v4003_v6 }
 0x290   : > { %v2866_v60 = vld [vmem:[%s4309_s9] ss:$0 sm:$0xff]  ;;  %s4000_s2 = sld [smem:[#allocation9 + %s3997_s24]]  ;;  %v4009_v16 = vsub.s32 %v1410_v9, %v4003_v6 }
 0x296   : > { %p2871_p13 = scmp.eq.s32.totalorder %s4000_s2, 0 }
 0x34f   : > { %v1360_v61 = vpop.f32.mrf.mxu0 }
 0x350   : > { %v1361_v62 = vadd.f32 %v2866_v60, %v1360_v61 }
 0x351   : > { %v2961_v63 = vpop.f32.mrf.mxu0 }
 0x352   : > { %1371 = vrot.lane.b32.xlu1 %v1361_v62, %s3536_s20  ;;  %1365 = vrot.lane.b32.xlu0 %v1361_v62, %s3537_s23 }
 0x356   : > { %1368 = vrot.lane.b32.xlu0 %v1361_v62, %s3538_s19 }
 0x3c4   : > { %v1372_v7 = vpop.permute.xlu1 %1371  ;;  %v1366_v8 = vpop.permute.xlu0 %1365 }
 0x3c5   : > { %v1390_v11 = vcombine.low %v1366_v8, %v1372_v7  ;;  %v1391_v12 = vcombine.high %v1366_v8, %v1372_v7 }
 0x3c7   : > { %v1398_v17 = vrot.slane %v1390_v11, %v4006_v10  ;;  %v1405_v18 = vrot.slane %v1391_v12, %v4006_v10 }
 0x3c8   : > { %v1369_v13 = vpop.permute.xlu0 %1368 }
 0x3c9   : > { %v1374_v14 = vcombine.low %v1361_v62, %v1369_v13  ;;  %v1375_v15 = vcombine.high %v1361_v62, %v1369_v13 }
 0x3cb   : > { %v1382_v19 = vrot.slane %v1374_v14, %v4006_v10  ;;  %v1389_v20 = vrot.slane %v1375_v15, %v4006_v10 }
 0x3cd   : > { %v1406_v21 = vcombine.low %v1382_v19, %v1398_v17  ;;  %v1407_v23 = vcombine.high %v1382_v19, %v1398_v17  ;;  %v1422_v24 = vcombine.low %v1389_v20, %v1405_v18  ;;  %v1423_v25 = vcombine.high %v1389_v20, %v1405_v18 }
 0x3cf   : > { %v1414_v26 = vrot.slane %v1406_v21, %v4009_v16  ;;  %v1421_v27 = vrot.slane %v1407_v23, %v4009_v16  ;;  %v1430_v28 = vrot.slane %v1422_v24, %v4009_v16  ;;  %v1437_v29 = vrot.slane %v1423_v25, %v4009_v16 }
 0x3d1   : > { %v1442_v30 = vcombine.low %v1414_v26, %v1421_v27  ;;  %v2868_v31 = vcombine.high %v1414_v26, %v1421_v27  ;;  %v1458_v32 = vcombine.low %v1430_v28, %v1437_v29  ;;  %v2869_v33 = vcombine.high %v1430_v28, %v1437_v29 }
 0x3d3   : > { %v1449_v34 = vrot.slane %v1442_v30, %v4006_v10  ;;  %v1457_v35 = vrot.slane %v2868_v31, %v4006_v10  ;;  %v1465_v37 = vrot.slane %v1458_v32, %v4006_v10  ;;  %v1473_v38 = vrot.slane %v2869_v33, %v4006_v10 }
 0x3d5   : > { %v1474_v39 = vcombine.low %v1449_v34, %v1457_v35  ;;  %v1475_v40 = vcombine.high %v1449_v34, %v1457_v35  ;;  %v1490_v41 = vcombine.low %v1465_v37, %v1473_v38  ;;  %v1491_v42 = vcombine.high %v1465_v37, %v1473_v38 }
 0x3d7   : > { %v1482_v43 = vrot.slane %v1474_v39, %v4009_v16  ;;  %v1489_v44 = vrot.slane %v1475_v40, %v4009_v16  ;;  %v1498_v45 = vrot.slane %v1490_v41, %v4009_v16  ;;  %v1505_v46 = vrot.slane %v1491_v42, %v4009_v16 }
 0x3d8   : > { %1521 = sbr.rel (%p2871_p13) target bundleno = 1688 (0x698), region = 100 }
 0x3d9   : > { %v1506_v47 = vcombine.low %v1482_v43, %v1498_v45  ;;  %v1507_v22 = vcombine.high %v1482_v43, %v1498_v45  ;;  %v1508_v48 = vcombine.low %v1489_v44, %v1505_v46  ;;  %v1509_v49 = vcombine.high %v1489_v44, %v1505_v46 }
 0x3db   : > { %1510 = vst.msk [vmem:[#allocation4] sm:$0xff] %vm1273_vm5, %v1506_v47  ;;  %1511 = vst.msk [vmem:[#allocation4 + $0x8] sm:$0xff] %vm1273_vm5, %v1507_v22 }
 0x3dc   : > { %1512 = vst.msk [vmem:[#allocation4 + $0x10] sm:$0xff] %vm1273_vm5, %v1508_v48  ;;  %1513 = vst.msk [vmem:[#allocation4 + $0x18] sm:$0xff] %vm1273_vm5, %v1509_v49 }
 0x3dd   : > { %v1529_v50 = vld [vmem:[#allocation2 + $0x8] sm:$0xff]  ;;  %v1531_v51 = vld [vmem:[#allocation2 + $0x18] sm:$0xff]  ;;  %v3541_v52 = vmov 0.0   ;;  %v1528_v53 = vld [vmem:[#allocation2] sm:$0xff]  ;;  %vm3542_vm6 = vmmov 0   ;;  %vm1864_vm7 = vcmask 130048  }
 0x3de   : > { %2962 = vmatprep.subr.mxu0 %v3541_v52  ;;  %2969 = vmatprep.subr.mxu1 %v3541_v52  ;;  %v1530_v54 = vld [vmem:[#allocation2 + $0x10] sm:$0xff]  ;;  %v1533_v57 = vld [vmem:[#allocation2 + $0x28] sm:$0xff]  ;;  %v1535_v58 = vld [vmem:[#allocation2 + $0x38] sm:$0xff]  ;;  %v1882_v21 = vand.u32 127, %v1379_v2  ;;  %vm1899_vm8 = vcmask 1041409   ;;  %vm1901_vm9 = vcmask 1042434  }
 0x3df   : > { %2963 = vmatpush3.xpose.msk.msra.mxu0 %vm1273_vm5, %v1529_v50  ;;  %2970 = vmatpush3.xpose.msk.msra.mxu1 %vm1273_vm5, %v1531_v51  ;;  %v1532_v59 = vld [vmem:[#allocation2 + $0x20] sm:$0xff]  ;;  %v1534_v60 = vld [vmem:[#allocation2 + $0x30] sm:$0xff]  ;;  %vm1903_vm10 = vcmask 1043459   ;;  %v1919_v33 = vsub.s32 1, %v4003_v6  ;;  %v1912_v34 = vsub.s32 0, %v4003_v6  ;;  %v1926_v41 = vsub.s32 2, %v4003_v6 }
 0x3e0   : > { %2964 = vmatprep.subr.mxu0 %v3541_v52  ;;  %2971 = vmatprep.subr.mxu1 %v3541_v52  ;;  %v1545_v63 = vld [vmem:[%s496_s10] sm:$0xff]  ;;  %v4086_v24 = vsub.s32 %v1882_v21, %v4003_v6  ;;  %v1538_v42 = vld [vmem:[#allocation3 + $0x8] sm:$0xff]  ;;  %v1539_v46 = vld [vmem:[#allocation3 + $0x10] sm:$0xff]  ;;  %v1933_v22 = vsub.s32 3, %v4003_v6 }
 0x3e1   : > { %2966 = vmatprep.mubr.msk.f32.mxu0 %vm3542_vm6, %v3541_v52  ;;  %2973 = vmatprep.mubr.msk.f32.mxu1 %vm3542_vm6, %v3541_v52  ;;  %v1863_v31 = vld [vmem:[#allocation5] sm:$0xf]  ;;  %v1540_v43 = vld [vmem:[#allocation3 + $0x18] sm:$0xff] }
 0x3e2   : > { %v1522_v55 = vld [vmem:[#allocation4] sm:$0xff]  ;;  %v1523_v56 = vld [vmem:[#allocation4 + $0x8] sm:$0xff] }
 0x3e3   : > { %2965 = vmatpush3.xpose.msk.msra.mxu0 %vm1273_vm5, %v1528_v53  ;;  %2972 = vmatpush3.xpose.msk.msra.mxu1 %vm1273_vm5, %v1530_v54  ;;  %v1524_v61 = vld [vmem:[#allocation4 + $0x10] sm:$0xff]  ;;  %v1525_v62 = vld [vmem:[#allocation4 + $0x18] sm:$0xff]  ;;  %v1537_v45 = vld [vmem:[#allocation3] sm:$0xff] }
 0x3e4   : > { %2976 = vmatprep.subr.mxu0 %v3541_v52  ;;  %2983 = vmatprep.subr.mxu1 %v3541_v52 }
 0x3e6   : > { %2967 = vmatmul.mubr.msk.f32.vlgmr.msra.gmra.mxu0 %vm1273_vm5, %v1522_v55  ;;  %2974 = vmatmul.mubr.msk.f32.vlgmr.msra.gmra.mxu1 %vm1273_vm5, %v1523_v56 }
 0x3e7   : > { %2977 = vmatpush3.xpose.msk.msra.mxu0 %vm1273_vm5, %v1533_v57  ;;  %2984 = vmatpush3.xpose.msk.msra.mxu1 %vm1273_vm5, %v1535_v58 }
 0x3e8   : > { %2978 = vmatprep.subr.mxu0 %v3541_v52  ;;  %2985 = vmatprep.subr.mxu1 %v3541_v52 }
 0x3e9   : > { %2980 = vmatprep.mubr.msk.f32.mxu0 %vm3542_vm6, %v3541_v52  ;;  %2987 = vmatprep.mubr.msk.f32.mxu1 %vm3542_vm6, %v3541_v52 }
 0x3eb   : > { %2979 = vmatpush3.xpose.msk.msra.mxu0 %vm1273_vm5, %v1532_v59  ;;  %2986 = vmatpush3.xpose.msk.msra.mxu1 %vm1273_vm5, %v1534_v60 }
 0x3ec   : > { %2990 = vmatprep.subr.mxu0 %v3541_v52  ;;  %2997 = vmatprep.subr.mxu1 %v3541_v52 }
 0x3ee   : > { %2981 = vmatmul.mubr.msk.f32.vlgmr.msra.gmra.mxu0 %vm1273_vm5, %v1524_v61  ;;  %2988 = vmatmul.mubr.msk.f32.vlgmr.msra.gmra.mxu1 %vm1273_vm5, %v1525_v62 }
 0x3ef   : > { %2994 = vmatprep.mubr.msk.f32.mxu0 %vm3542_vm6, %v3541_v52  ;;  %3001 = vmatprep.mubr.msk.f32.mxu1 %vm3542_vm6, %v3541_v52 }
 0x3f0   : > { %2991 = vmatpush3.msra.mxu0 %v1538_v42  ;;  %2998 = vmatpush3.msra.mxu1 %v1540_v43  ;;  %v2313_v42 = vld [vmem:[#allocation7 + $0x10] sm:$0xff] }
 0x3f1   : > { %2992 = vmatprep.subr.mxu0 %v3541_v52  ;;  %2999 = vmatprep.subr.mxu1 %v3541_v52 }
 0x3f2   : > { %2993 = vmatpush3.msra.mxu0 %v1537_v45  ;;  %3000 = vmatpush3.msra.mxu1 %v1539_v46 }
 0x3f3   : > { %3004 = vmatprep.subr.mxu0 %v3541_v52  ;;  %3011 = vmatprep.subr.mxu1 %v3541_v52 }
 0x4a6   : > { %v1622_v0 = vpop.f32.mrf.mxu0  ;;  %v1701_v1 = vpop.f32.mrf.mxu1 }
 0x4a7   : > { %v4068_v3 = vadd.f32 %v1622_v0, %v1545_v63  ;;  %v4070_v4 = vadd.f32 %v1701_v1, %v1545_v63 }
 0x4a8   : > { %v2968_v5 = vpop.f32.mrf.mxu0  ;;  %v2975_v7 = vpop.f32.mrf.mxu1 }
 0x4a9   : > { %v1865_v8 = vsel %vm1864_vm7, %v4068_v3, -inf  ;;  %v1868_v9 = vsel %vm1864_vm7, %v4070_v4, -inf }
 0x4aa   : > { %1866 = vmax.xlane.f32.xlu0 %v1865_v8  ;;  %v1542_v8 = vld [vmem:[#allocation3 + $0x28] sm:$0xff] }
 0x4ae   : > { %1869 = vmax.xlane.f32.xlu0 %v1868_v9  ;;  %v1780_v11 = vpop.f32.mrf.mxu0  ;;  %v1859_v12 = vpop.f32.mrf.mxu1 }
 0x4af   : > { %v4076_v13 = vadd.f32 %v1780_v11, %v1545_v63  ;;  %v4078_v14 = vadd.f32 %v1859_v12, %v1545_v63  ;;  %v1541_v11 = vld [vmem:[#allocation3 + $0x20] sm:$0xff]  ;;  %v1544_v12 = vld [vmem:[#allocation3 + $0x38] sm:$0xff] }
 0x4b0   : > { %v2982_v15 = vpop.f32.mrf.mxu0  ;;  %v2989_v17 = vpop.f32.mrf.mxu1 }
 0x4b1   : > { %v1871_v18 = vsel %vm1864_vm7, %v4076_v13, -inf  ;;  %v1874_v19 = vsel %vm1864_vm7, %v4078_v14, -inf }
 0x4b2   : > { %1872 = vmax.xlane.f32.xlu1 %v1871_v18 }
 0x4b6   : > { %1875 = vmax.xlane.f32.xlu1 %v1874_v19 }
 0x533   : > { %v1867_v20 = vpop.xlane.xlu0 %1866 }
 0x534   : > { %v1886_v28 = vrot.slane %v1867_v20, %v4086_v24 }
 0x537   : > { %v1870_v23 = vpop.xlane.xlu0 %1869 }
 0x538   : > { %v1890_v26 = vrot.slane %v1870_v23, %v4086_v24 }
 0x53a   : > { %v1900_v30 = vsel %vm1899_vm8, %v1890_v26, %v1886_v28 }
 0x53b   : > { %v1873_v25 = vpop.xlane.xlu1 %1872 }
 0x53c   : > { %v1894_v27 = vrot.slane %v1873_v25, %v4086_v24 }
 0x53e   : > { %v1902_v32 = vsel %vm1901_vm9, %v1894_v27, %v1900_v30  ;;  %v1950_v27 = vld [vmem:[#allocation6] sm:$0xf] }
 0x53f   : > { %v1876_v29 = vpop.xlane.xlu1 %1875 }
 0x540   : > { %v1898_v2 = vrot.slane %v1876_v29, %v4086_v24 }
 0x542   : > { %v1904_v35 = vsel %vm1903_vm10, %v1898_v2, %v1902_v32 }
 0x543   : > { %v1906_v37 = vmax.f32 %v1863_v31, %v1904_v35  ;;  %v2311_v35 = vld [vmem:[#allocation7] sm:$0xff] }
 0x545   : > { %v1907_v38 = vsub.f32 %v1863_v31, %v1906_v37  ;;  %2327 = vst.msk [vmem:[#allocation5] sm:$0xf] %vm1270_vm2, %v1906_v37  ;;  %v1920_v39 = vrot.slane %v1906_v37, %v1919_v33  ;;  %v1913_v40 = vrot.slane %v1906_v37, %v1912_v34  ;;  %v1927_v47 = vrot.slane %v1906_v37, %v1926_v41 }
 0x546   : > { %v1934_v48 = vrot.slane %v1906_v37, %v1933_v22 }
 0x547   : > { %v1908_v44 = vmul.f32 1.442695, %v1907_v38  ;;  %1922 = vbcast.lane.b32.xlu1 %v1920_v39, 256  ;;  %1915 = vbcast.lane.b32.xlu0 %v1913_v40, 256 }
 0x549   : > { %3194 = vpow2.f32 %v1908_v44 }
 0x54b   : > { %1929 = vbcast.lane.b32.xlu1 %v1927_v47, 256 }
 0x54f   : > { %1936 = vbcast.lane.b32.xlu1 %v1934_v48, 256 }
 0x556   : > { %v4104_v49 = vpop.eup %3194 }
 0x557   : > { %v2293_v50 = vrot.slane %v4104_v49, %v1919_v33  ;;  %v2300_v51 = vrot.slane %v4104_v49, %v1926_v41  ;;  %v2307_v53 = vrot.slane %v4104_v49, %v1933_v22  ;;  %v2286_v54 = vrot.slane %v4104_v49, %v1912_v34  ;;  %v2312_v34 = vld [vmem:[#allocation7 + $0x8] sm:$0xff]  ;;  %v2314_v22 = vld [vmem:[#allocation7 + $0x18] sm:$0xff] }
 0x558   : > { %v1951_v31 = vmul.f32 %v4104_v49, %v1950_v27 }
 0x5b9   : > { %v1923_v55 = vpop.permute.xlu1 %1922  ;;  %v1916_v56 = vpop.permute.xlu0 %1915 }
 0x5ba   : > { %v1939_v57 = vsub.f32 %v4070_v4, %v1923_v55  ;;  %v1938_v58 = vsub.f32 %v4068_v3, %v1916_v56 }
 0x5bc   : > { %v1944_v59 = vmul.f32 1.442695, %v1939_v57  ;;  %v1942_v60 = vmul.f32 1.442695, %v1938_v58 }
 0x5bd   : > { %v1930_v61 = vpop.permute.xlu1 %1929 }
 0x5be   : > { %3196 = vpow2.f32 %v1944_v59  ;;  %v1940_v62 = vsub.f32 %v4076_v13, %v1930_v61 }
 0x5bf   : > { %3198 = vpow2.f32 %v1942_v60 }
 0x5c0   : > { %v1946_v63 = vmul.f32 1.442695, %v1940_v62 }
 0x5c1   : > { %v1937_v0 = vpop.permute.xlu1 %1936 }
 0x5c2   : > { %3200 = vpow2.f32 %v1946_v63  ;;  %v1941_v1 = vsub.f32 %v4078_v14, %v1937_v0  ;;  %v1543_v14 = vld [vmem:[#allocation3 + $0x30] sm:$0xff] }
 0x5c4   : > { %v1948_v5 = vmul.f32 1.442695, %v1941_v1 }
 0x5c6   : > { %3202 = vpow2.f32 %v1948_v5 }
 0x5cb   : > { %v3197_v7 = vpop.eup %3196 }
 0x5cc   : > { %v3199_v9 = vpop.eup %3198  ;;  %3002 = vmatmul.mubr.msk.f32.vlgmr.msra.gmra.mxu1 %vm1864_vm7, %v3197_v7  ;;  %v1955_v3 = vsel %vm1864_vm7, %v3197_v7, 0.0 }
 0x5cd   : > { %2995 = vmatmul.mubr.msk.f32.vlgmr.msra.gmra.mxu0 %vm1864_vm7, %v3199_v9  ;;  %1956 = vadd.xlane.f32.xlu1 %v1955_v3  ;;  %v1952_v4 = vsel %vm1864_vm7, %v3199_v9, 0.0 }
 0x5ce   : > { %3005 = vmatpush3.msra.mxu0 %v1542_v8  ;;  %1953 = vadd.xlane.f32.xlu0 %v1952_v4 }
 0x5cf   : > { %v3201_v13 = vpop.eup %3200  ;;  %3006 = vmatprep.subr.mxu0 %v3541_v52  ;;  %3008 = vmatprep.mubr.msk.f32.mxu0 %vm3542_vm6, %v3541_v52 }
 0x5d0   : > { %3007 = vmatpush3.msra.mxu0 %v1541_v11  ;;  %3012 = vmatpush3.msra.mxu1 %v1544_v12  ;;  %v1958_v15 = vsel %vm1864_vm7, %v3201_v13, 0.0 }
 0x5d1   : > { %3009 = vmatmul.mubr.msk.f32.vlgmr.msra.gmra.mxu0 %vm1864_vm7, %v3201_v13  ;;  %3013 = vmatprep.subr.mxu1 %v3541_v52 }
 0x5d2   : > { %1959 = vadd.xlane.f32.xlu0 %v1958_v15  ;;  %3014 = vmatpush3.msra.mxu1 %v1543_v14 }
 0x5d3   : > { %v3203_v17 = vpop.eup %3202  ;;  %3015 = vmatprep.mubr.msk.f32.mxu1 %vm3542_vm6, %v3541_v52 }
 0x5d4   : > { %3016 = vmatmul.mubr.msk.f32.vlgmr.msra.gmra.mxu1 %vm1864_vm7, %v3203_v17  ;;  %v1961_v18 = vsel %vm1864_vm7, %v3203_v17, 0.0 }
 0x5d6   : > { %1962 = vadd.xlane.f32.xlu0 %v1961_v18 }
 0x5de   : > { %2295 = vbcast.lane.b32.xlu1 %v2293_v50, 256 }
 0x5e2   : > { %2302 = vbcast.lane.b32.xlu1 %v2300_v51, 256 }
 0x5e6   : > { %2309 = vbcast.lane.b32.xlu1 %v2307_v53, 256 }
 0x5ec   : > { %2288 = vbcast.lane.b32.xlu0 %v2286_v54, 256 }
 0x656   : > { %v1957_v20 = vpop.xlane.xlu1 %1956 }
 0x657   : > { %v1954_v19 = vpop.xlane.xlu0 %1953  ;;  %v1975_v23 = vrot.slane %v1957_v20, %v4086_v24 }
 0x658   : > { %v1971_v25 = vrot.slane %v1954_v19, %v4086_v24 }
 0x65a   : > { %v1984_v28 = vsel %vm1899_vm8, %v1975_v23, %v1971_v25  ;;  %v2296_v33 = vpop.permute.xlu1 %2295 }
 0x65b   : > { %v1960_v21 = vpop.xlane.xlu0 %1959  ;;  %v2316_v39 = vmul.f32 %v2312_v34, %v2296_v33 }
 0x65c   : > { %v1979_v26 = vrot.slane %v1960_v21, %v4086_v24 }
 0x65e   : > { %v1985_v30 = vsel %vm1901_vm9, %v1979_v26, %v1984_v28  ;;  %v2303_v38 = vpop.permute.xlu1 %2302 }
 0x65f   : > { %v1963_v52 = vpop.xlane.xlu0 %1962  ;;  %v2317_v47 = vmul.f32 %v2313_v42, %v2303_v38 }
 0x660   : > { %v1983_v29 = vrot.slane %v1963_v52, %v4086_v24 }
 0x662   : > { %v1986_v2 = vsel %vm1903_vm10, %v1983_v29, %v1985_v30  ;;  %v2310_v48 = vpop.permute.xlu1 %2309 }
 0x663   : > { %v1988_v32 = vadd.f32 %v1986_v2, %v1951_v31  ;;  %v2289_v37 = vpop.permute.xlu0 %2288  ;;  %v2318_v51 = vmul.f32 %v2314_v22, %v2310_v48 }
 0x664   : > { %v2315_v40 = vmul.f32 %v2311_v35, %v2289_v37 }
 0x665   : > { %1990 = vst.msk [vmem:[#allocation6] sm:$0xf] %vm1270_vm2, %v1988_v32 }
 0x68c   : > { %v2133_v41 = vpop.f32.mrf.mxu1 }
 0x68d   : > { %v2060_v43 = vpop.f32.mrf.mxu0  ;;  %v2320_v24 = vadd.f32 %v2316_v39, %v2133_v41 }
 0x68e   : > { %v2319_v44 = vadd.f32 %v2315_v40, %v2060_v43  ;;  %v3003_v45 = vpop.f32.mrf.mxu1 }
 0x68f   : > { %2324 = vst.msk [vmem:[#allocation7 + $0x8] sm:$0xff] %vm1273_vm5, %v2320_v24  ;;  %v2996_v46 = vpop.f32.mrf.mxu0 }
 0x690   : > { %2323 = vst.msk [vmem:[#allocation7] sm:$0xff] %vm1273_vm5, %v2319_v44 }
 0x691   : > { %v2206_v49 = vpop.f32.mrf.mxu0 }
 0x692   : > { %v2321_v50 = vadd.f32 %v2317_v47, %v2206_v49 }
 0x693   : > { %v3010_v53 = vpop.f32.mrf.mxu0 }
 0x694   : > { %2325 = vst.msk [vmem:[#allocation7 + $0x10] sm:$0xff] %vm1273_vm5, %v2321_v50  ;;  %v2279_v54 = vpop.f32.mrf.mxu1 }
 0x695   : > { %v2322_v55 = vadd.f32 %v2318_v51, %v2279_v54 }
 0x696   : > { %v3017_v56 = vpop.f32.mrf.mxu1 }
 0x697   : > { %2326 = vst.msk [vmem:[#allocation7 + $0x18] sm:$0xff] %vm1273_vm5, %v2322_v55 }
 0x698 PF: > { %v2331_v57 = vld [vmem:[#allocation6] sm:$0xf]  ;;  %3018 = vmatprep.subr.mxu0 %v3534_v36  ;;  %3026 = vmatprep.mubr.msk.f32.mxu0 %vm3535_vm3, %v3534_v36  ;;  %v2353_v58 = vsub.s32 2, %v4003_v6  ;;  %v2339_v59 = vsub.s32 0, %v4003_v6  ;;  %v2360_v60 = vsub.s32 3, %v4003_v6  ;;  %v2346_v61 = vsub.s32 1, %v4003_v6 }
 0x699   : > { %3204 = vrcp.f32 %v2331_v57  ;;  %v2526_v7 = vld [vmem:[#allocation19 + $0x18] sm:$0xff]  ;;  %v2333_v9 = vld [vmem:[#allocation7] sm:$0xff]  ;;  %v2334_v13 = vld [vmem:[#allocation7 + $0x8] sm:$0xff]  ;;  %s3543_s10 = smov 16   ;;  %s3544_s8 = smov 8   ;;  %vm2519_vm11 = vcmask 130048  }
 0x69a   : > { %3019 = vmatpush3.msra.mxu0 %v2526_v7  ;;  %v2525_v2 = vld [vmem:[#allocation19 + $0x10] sm:$0xff]  ;;  %v2524_v37 = vld [vmem:[#allocation19 + $0x8] sm:$0xff]  ;;  %v2523_v42 = vld [vmem:[#allocation19] sm:$0xff]  ;;  %s3545_s29 = smov 24   ;;  %vm2521_vm12 = vcmask 195584   ;;  %s4310_s22 = sld [smem:[#allocation43_spill]] }
 0x69b   : > { %3020 = vmatprep.subr.mxu0 %v3534_v36  ;;  %v2335_v8 = vld [vmem:[#allocation7 + $0x10] sm:$0xff]  ;;  %s4312_s4 = sld [smem:[#allocation44_spill]]  ;;  %s2896_s19 = sshll.u32 %s3997_s24, 7 }
 0x69c   : > { %3021 = vmatpush3.msra.mxu0 %v2525_v2  ;;  %s4313_s23 = sld [smem:[#allocation45_spill]]  ;;  %s2657_s16 = sshll.u32 %s556_s17, 4  ;;  %s2658_s16 = int_to_ptr.vmem [resolvable:$true] %s2657_s16 }
 0x69d   : > { %3022 = vmatprep.subr.mxu0 %v3534_v36  ;;  %s2642_s12 = scalar_lea.sflag [#allocation12], %s3845_s25  ;;  %s3378_s11 = scalar_lea.vmem %s2658_s16, 128 }
 0x69e   : > { %v2336_v6 = vld [vmem:[#allocation7 + $0x18] sm:$0xff]  ;;  %3023 = vmatpush3.msra.mxu0 %v2524_v37  ;;  %p3379_p3 = scmp.ne.s32.totalorder %s2658_s16, %s3378_s11 }
 0x69f   : > { %3024 = vmatprep.subr.mxu0 %v3534_v36 }
 0x6a0   : > { %3025 = vmatpush3.msra.mxu0 %v2523_v42  ;;  %p3380_p11 = pnand %p3379_p3, %p3785_p1 }
 0x6a2   : > { %p3381_p12 = pneg %p3380_p11 }
 0x6a6   : > { %v3205_v62 = vpop.eup %3204 }
 0x6a7   : > { %v2354_v63 = vrot.slane %v3205_v62, %v2353_v58  ;;  %v2340_v0 = vrot.slane %v3205_v62, %v2339_v59  ;;  %v2361_v1 = vrot.slane %v3205_v62, %v2360_v60  ;;  %v2347_v5 = vrot.slane %v3205_v62, %v2346_v61  ;;  %v2890_v61 = vld [vmem:[%s4310_s22] ss:$0 sm:$0xff]  ;;  %s3546_s22 = smov [#allocation21]  }
 0x6a8   : > { %s3382_s24 = sshll.u32 %s3546_s22, 4  ;;  %s3383_s24 = int_to_ptr.vmem [resolvable:$false] %s3382_s24 }
 0x6a9   : > { %2356 = vbcast.lane.b32.xlu1 %v2354_v63, 256  ;;  %2342 = vbcast.lane.b32.xlu0 %v2340_v0, 256  ;;  %v2608_v63 = vld [vmem:[%s478_s6] sm:$0xff]  ;;  %s3384_s18 = scalar_lea.vmem %s3383_s24, 256  ;;  %p3385_p10 = scmp.lt.s32.totalorder %s2658_s16, %s3383_s24 }
 0x6aa   : > { %p3386_p0 = scmp.lt.s32.totalorder %s3384_s18, %s3378_s11 }
 0x6ac   : > { %p3387_p2 = por %p3386_p0, %p3385_p10 }
 0x6ad   : > { %2363 = vbcast.lane.b32.xlu1 %v2361_v1, 256  ;;  %2349 = vbcast.lane.b32.xlu0 %v2347_v5, 256 }
 0x6ae   : > { %p3388_p9 = pnand %p3387_p2, %p3381_p12 }
 0x71b   : > { %v2357_v3 = vpop.permute.xlu1 %2356  ;;  %v2343_v4 = vpop.permute.xlu0 %2342 }
 0x71c   : > { %v2367_v11 = vmul.f32 %v2357_v3, %v2335_v8  ;;  %v2365_v12 = vmul.f32 %v2343_v4, %v2333_v9 }
 0x71e   : > { %v2369_v17 = vcombine.low %v2365_v12, %v2367_v11  ;;  %v2370_v18 = vcombine.high %v2365_v12, %v2367_v11 }
 0x71f   : > { %v2364_v14 = vpop.permute.xlu1 %2363  ;;  %v2350_v15 = vpop.permute.xlu0 %2349 }
 0x720   : > { %v2368_v19 = vmul.f32 %v2364_v14, %v2336_v6  ;;  %v2366_v20 = vmul.f32 %v2350_v15, %v2334_v13  ;;  %v2377_v25 = vrot.slane %v2369_v17, %v4006_v10  ;;  %v2384_v26 = vrot.slane %v2370_v18, %v4006_v10  ;;  %v2892_v15 = vld [vmem:[%s4312_s4] ss:$0 sm:$0xff] }
 0x721   : > { %v2893_v18 = vld [vmem:[%s4313_s23] ss:$0 sm:$0xff] }
 0x722   : > { %v2385_v21 = vcombine.low %v2366_v20, %v2368_v19  ;;  %v2386_v23 = vcombine.high %v2366_v20, %v2368_v19 }
 0x724   : > { %v2393_v27 = vrot.slane %v2385_v21, %v4006_v10  ;;  %v2400_v52 = vrot.slane %v2386_v23, %v4006_v10 }
 0x726   : > { %v2401_v28 = vcombine.low %v2377_v25, %v2393_v27  ;;  %v2402_v29 = vcombine.high %v2377_v25, %v2393_v27  ;;  %v2417_v30 = vcombine.low %v2384_v26, %v2400_v52  ;;  %v2418_v31 = vcombine.high %v2384_v26, %v2400_v52 }
 0x728   : > { %v2409_v32 = vrot.slane %v2401_v28, %v4009_v16  ;;  %v2416_v33 = vrot.slane %v2402_v29, %v4009_v16  ;;  %v2425_v34 = vrot.slane %v2417_v30, %v4009_v16  ;;  %v2432_v35 = vrot.slane %v2418_v31, %v4009_v16 }
 0x72a   : > { %v2437_v38 = vcombine.low %v2409_v32, %v2416_v33  ;;  %v2888_v39 = vcombine.high %v2409_v32, %v2416_v33  ;;  %v2453_v40 = vcombine.low %v2425_v34, %v2432_v35  ;;  %v2889_v41 = vcombine.high %v2425_v34, %v2432_v35 }
 0x72c   : > { %v2444_v43 = vrot.slane %v2437_v38, %v4006_v10  ;;  %v2452_v24 = vrot.slane %v2888_v39, %v4006_v10  ;;  %v2460_v44 = vrot.slane %v2453_v40, %v4006_v10  ;;  %v2468_v45 = vrot.slane %v2889_v41, %v4006_v10 }
 0x72e   : > { %v2470_v46 = vcombine.high %v2444_v43, %v2452_v24  ;;  %v2486_v47 = vcombine.high %v2460_v44, %v2468_v45  ;;  %v2469_v22 = vcombine.low %v2444_v43, %v2452_v24  ;;  %v2485_v48 = vcombine.low %v2460_v44, %v2468_v45 }
 0x730   : > { %v2484_v49 = vrot.slane %v2470_v46, %v4009_v16  ;;  %v2500_v50 = vrot.slane %v2486_v47, %v4009_v16  ;;  %v2477_v36 = vrot.slane %v2469_v22, %v4009_v16  ;;  %v2493_v51 = vrot.slane %v2485_v48, %v4009_v16 }
 0x732   : > { %v2503_v53 = vcombine.low %v2484_v49, %v2500_v50  ;;  %v2502_v54 = vcombine.high %v2477_v36, %v2493_v51  ;;  %v2501_v55 = vcombine.low %v2477_v36, %v2493_v51  ;;  %v2504_v10 = vcombine.high %v2484_v49, %v2500_v50 }
 0x734   : > { %2510 = vrot.lane.b32.xlu1 %v2503_v53, %s3543_s10  ;;  %2506 = vrot.lane.b32.xlu0 %v2502_v54, %s3544_s8  ;;  %s4314_s8 = sld [smem:[#allocation46_spill]] }
 0x738   : > { %2514 = vrot.lane.b32.xlu0 %v2504_v10, %s3545_s29 }
 0x73a   : > { %s2655_s29 = scalar_lea.hbm %s4314_s8, %s2896_s19 }
 0x7a6   : > { %v2507_v56 = vpop.permute.xlu0 %2506  ;;  %v2511_v57 = vpop.permute.xlu1 %2510 }
 0x7a7   : > { %v2518_v58 = vsel %vm1273_vm5, %v2501_v55, %v2507_v56 }
 0x7a8   : > { %v2520_v59 = vsel %vm2519_vm11, %v2518_v58, %v2511_v57 }
 0x7aa   : > { %v2515_v60 = vpop.permute.xlu0 %2514 }
 0x7ab   : > { %v2522_v16 = vsel %vm2521_vm12, %v2520_v59, %v2515_v60 }
 0x7ac   : > { %3027 = vmatmul.mubr.msk.f32.vlgmr.msra.gmra.mxu0 %vm1290_vm4, %v2522_v16 }
 0x86c   : > { %v2604_v62 = vpop.f32.mrf.mxu0 }
 0x86d   : > { %v2605_v0 = vadd.f32 %v2890_v61, %v2604_v62 }
 0x86e   : > { %v3028_v1 = vpop.f32.mrf.mxu0 }
 0x86f   : > { %v2609_v5 = vadd.f32 %v2608_v63, %v2605_v0 }
 0x871   : > { %v2610_v7 = vsel %vm1290_vm4, %v2609_v5, 0.0 }
 0x872   : > { %2611 = vadd.xlane.f32.xlu1 %v2610_v7 }
 0x8fb   : > { %v2612_v8 = vpop.xlane.xlu1 %2611 }
 0x8fc   : > { %v2614_v9 = vmul.f32 0.03125, %v2612_v8 }
 0x8fe   : > { %v2615_v3 = vsub.f32 %v2609_v5, %v2614_v9 }
 0x900   : > { %v2616_v4 = vmul.f32 %v2615_v3, %v2615_v3 }
 0x902   : > { %v2617_v11 = vsel %vm1290_vm4, %v2616_v4, 0.0 }
 0x903   : > { %2618 = vadd.xlane.f32.xlu0 %v2617_v11 }
 0x98c   : > { %v2619_v12 = vpop.xlane.xlu0 %2618 }
 0x98d   : > { %v2620_v6 = vmul.f32 0.03125, %v2619_v12 }
 0x98f   : > { %v2621_v13 = vadd.f32 1e-05, %v2620_v6 }
 0x991   : > { %3206 = vrsqrt.f32 %v2621_v13 }
 0x99e   : > { %v3207_v14 = vpop.eup %3206 }
 0x99f   : > { %v2623_v17 = vmul.f32 %v3207_v14, %v2615_v3 }
 0x9a1   : > { %v2631_v19 = vmul.f32 %v2892_v15, %v2623_v17 }
 0x9a3   : > { %v2639_v20 = vadd.f32 %v2893_v18, %v2631_v19 }
 0x9a5   : > { %2640 = vst.msk [vmem:[%s556_s17] sm:$0xff] %vm1290_vm4, %v2639_v20 }
 0x9a6   : > { %3391 = shalt.err (!%p3388_p9)
}
 0x9a7   : > { %s3392_s30 = scalar_lea.hbm %s2655_s29, 128  ;;  %s3396_s17 = scalar_lea.hbm %s4314_s8, 512 }
 0x9a8   : > { %p3393_p5 = scmp.ne.s32.totalorder %s2655_s29, %s3392_s30  ;;  %p3397_p7 = scmp.lt.s32.totalorder %s2655_s29, %s4314_s8 }
 0x9a9   : > { %p3398_p4 = scmp.lt.s32.totalorder %s3396_s17, %s3392_s30 }
 0x9aa   : > { %p3394_p8 = pnand %p3393_p5, %p3785_p1 }
 0x9ab   : > { %p3399_p13 = por %p3398_p4, %p3397_p7 }
 0x9ac   : > { %p3395_p6 = pneg %p3394_p8 }
 0x9ae   : > { %p3400_p3 = pnand %p3399_p13, %p3395_p6 }
 0x9b0   : > { %3403 = shalt.err (!%p3400_p3)
}
 0x9b1   : > { %3047 = dma.vmem_to_hbm [thread:$0]  (%p3785_p1), %s2658_s16, 128, %s2655_s29, %s2642_s12  }
 0x9b2 PF: > { %s4315_s20 = sld [smem:[#allocation30_spill]]  ;;  %p3080_p11 = scmp.ge.s32.totalorder %s3516_s15, 2 }
 0x9b3   : > { %s4316_s23 = sld [smem:[#allocation36_spill]] }
 0x9b8   : > { %s2669_s19 = sand.u32 1, %s4315_s20  }
 0x9b9   : > { %p4317_p12 = scmp.ne.s32.totalorder %s4316_s23, 0  ;;  %s2670_s2 = scalar_lea.sflag [#allocation12], %s2669_s19 }
 0x9bb   : > { %p3070_p10 = pnand %p3080_p11, %p4317_p12 }
 0x9bd   : > { %p3071_p0 = pneg %p3070_p10 }
 0x9bf   : > { %3471 = dma.done.wait (%p3071_p0), %s2670_s2, 128  }
 0x9c0   : > { %3473 = vsyncadd (%p3071_p0), %s2670_s2, 4294967168  ;;  %s37_s15 = sadd.s32 1, %s3516_s15   ;;  %s4318_s24 = sld [smem:[#allocation29_spill]] }
 0x9c1   : > { %p34_p2 = scmp.ge.s32.totalorder %s37_s15, 6   ;;  %s4319_s6 = sld [smem:[#allocation34_spill]] }
 0x9c2   : > { %s4320_s25 = smov %s3484_s26  ;;  %s4321_s26 = smov %s3799_s7 }
 0x9c3   : > { %s4322_s27 = smov %s3492_s0  ;;  %s4323_s0 = smov %s3496_s28 }
 0x9c4   : > { %s4324_s28 = smov %s3802_s21  ;;  %s4325_s29 = smov %s3508_s13 }
 0x9c5   : > { %s4326_s30 = smov %s3512_s14  ;;  %s4328_s14 = smov %s4334_s5 }
 0x9c6   :  { %36 = sbr.rel (!%p34_p2) target bundleno = 28 (0x1c), region = 166 }
 0x9c7   : > { %s4327_s13 = smov %s4319_s6 }
 0x9cb   :  { %2675 = vsyncpa [#allocation11], 1 }
 0x9cc   :  { %2677 = vsyncpa [#allocation11 + $0x1], 1 }
 0x9cd   :  { %2678 = vsyncpa [#allocation14], 1 }
 0x9ce   :  { %2680 = vsyncpa [#allocation14 + $0x1], 1 }
 0x9cf   :  { %2681 = vsyncpa [#allocation17], 1 }
 0x9d0   :  { %2682 = vsyncpa [#allocation20], 1 }
 0x9d1   :  { %2683 = vsyncpa [#allocation12], 1 }
 0x9d2   :  { %2685 = vsyncpa [#allocation12 + $0x1], 1 }

</bundles_post_ra>
